<compile_context>
chip_gen: v5e
topology: v5e:2x2
jax: 0.10.0
libtpu: 0.0.40
codegen_flags: <defaults>
</compile_context>

<pallas_src>
import jax
import jax.numpy as jnp
from jax.experimental import pallas as pl
from jax.experimental.pallas import tpu as pltpu


def _mlp_kernel(x_ref, w1_ref, b1_ref, w2_ref, b2_ref, o_ref):
    # fc1: x @ W1 (bf16 inputs, f32 accumulation on the MXU) + b1, then ReLU.
    h = jnp.dot(x_ref[...], w1_ref[...], preferred_element_type=jnp.float32)
    h = jnp.maximum(h + b1_ref[...], 0.0)
    # Dropout (eval mode) -> identity.
    # fc2: h @ W2 + b2 (h downcast to bf16 for the MXU; accumulate in f32).
    out = jnp.dot(h.astype(w2_ref.dtype), w2_ref[...],
                  preferred_element_type=jnp.float32)
    o_ref[...] = (out + b2_ref[...]).astype(o_ref.dtype)


def user_embedding_projector(x, w1, b1, w2, b2, *, tile_b=128):
    """x: [B, D_in] f32; w1: [D_in, H]; b1: [1, H]; w2: [H, D_out]; b2: [1, D_out].

    Returns [B, D_out] f32. Weights are cast to bf16 for the MXU; biases stay f32.
    """
    B, d_in = x.shape
    H = w1.shape[1]
    d_out = w2.shape[1]

    # bf16 matmul inputs (native MXU dtype on v5e/v6e/v7x, halves HBM bytes).
    x_bf = x.astype(jnp.bfloat16)
    w1_bf = w1.astype(jnp.bfloat16)
    w2_bf = w2.astype(jnp.bfloat16)
    b1_f32 = b1.astype(jnp.float32)
    b2_f32 = b2.astype(jnp.float32)

    # Pad the contraction dim (D_in) of fc1 to a multiple of 128 for
    # lane-aligned, unmasked loads. Zero padding does not change x @ w1.
    k_pad = (-d_in) % 128
    if k_pad:
        x_bf = jnp.pad(x_bf, ((0, 0), (0, k_pad)))
        w1_bf = jnp.pad(w1_bf, ((0, k_pad), (0, 0)))
    d_in_p = d_in + k_pad

    # Pad batch to a multiple of tile_b; extra rows are sliced off at the end.
    n_tiles = pl.cdiv(B, tile_b)
    b_pad = n_tiles * tile_b - B
    if b_pad:
        x_bf = jnp.pad(x_bf, ((0, b_pad), (0, 0)))
    B_p = n_tiles * tile_b

    out = pl.pallas_call(
        _mlp_kernel,
        out_shape=jax.ShapeDtypeStruct((B_p, d_out), jnp.float32),
        grid=(n_tiles,),
        in_specs=[
            # x: tiled over batch.
            pl.BlockSpec((tile_b, d_in_p), lambda i: (i, 0)),
            # Weights/biases: constant index_map -> fetched once, VMEM-resident.
            pl.BlockSpec((d_in_p, H), lambda i: (0, 0)),
            pl.BlockSpec((1, H), lambda i: (0, 0)),
            pl.BlockSpec((H, d_out), lambda i: (0, 0)),
            pl.BlockSpec((1, d_out), lambda i: (0, 0)),
        ],
        out_specs=pl.BlockSpec((tile_b, d_out), lambda i: (i, 0)),
        compiler_params=pltpu.CompilerParams(
            dimension_semantics=("parallel",)),  # megacore sharding on v7x
    )(x_bf, w1_bf, b1_f32, w2_bf, b2_f32)

    return out[:B] if b_pad else out


def _init_linear(key, in_features, out_features, dtype=jnp.float32):
    """Deterministic PyTorch-style (kaiming-uniform-ish) init; weight stored [in, out]."""
    kw, kb = jax.random.split(key)
    bound = 1.0 / jnp.sqrt(jnp.asarray(in_features, dtype=jnp.float32))
    w = jax.random.uniform(kw, (in_features, out_features), dtype,
                           minval=-bound, maxval=bound)
    b = jax.random.uniform(kb, (1, out_features), dtype,
                           minval=-bound, maxval=bound)
    return w, b


if __name__ == "__main__":
    # Batch of user-embedding vectors. Batch is large enough to exercise the
    # grid (3 tiles of 128) and the batch-padding path (300 -> 384).
    batch = 300
    input_dim = 32
    hidden_dim = 256
    output_dim = 768

    key = jax.random.PRNGKey(0)
    kx, k1, k2 = jax.random.split(key, 3)

    x = jax.random.normal(kx, (batch, input_dim), jnp.float32)
    w1, b1 = _init_linear(k1, input_dim, hidden_dim)
    w2, b2 = _init_linear(k2, hidden_dim, output_dim)

    out = user_embedding_projector(x, w1, b1, w2, b2, tile_b=128)
    out = jax.block_until_ready(out)
    assert out.shape == (batch, output_dim)

    # Reference in plain JAX with the same bf16-input / f32-accumulate
    # semantics as the kernel (eval-mode dropout = identity).
    x_r = x.astype(jnp.bfloat16).astype(jnp.float32)
    w1_r = w1.astype(jnp.bfloat16).astype(jnp.float32)
    w2_r = w2.astype(jnp.bfloat16).astype(jnp.float32)
    h_r = jnp.maximum(x_r @ w1_r + b1, 0.0)
    ref = h_r.astype(jnp.bfloat16).astype(jnp.float32) @ w2_r + b2

    assert jnp.allclose(out, ref, atol=1e-2, rtol=1e-2), (
        float(jnp.max(jnp.abs(out - ref))))

    print("KERNEL_OK")
</pallas_src>

<mosaic_0001>
module attributes {stable_mosaic.version = 11 : i64} {
  func.func @_mlp_kernel(%arg0: i32, %arg1: memref<128x128xbf16, #tpu.memory_space<vmem>>, %arg2: memref<128x256xbf16, #tpu.memory_space<vmem>>, %arg3: memref<1x256xf32, #tpu.memory_space<vmem>>, %arg4: memref<256x768xbf16, #tpu.memory_space<vmem>>, %arg5: memref<1x768xf32, #tpu.memory_space<vmem>>, %arg6: memref<128x768xf32, #tpu.memory_space<vmem>>) attributes {dimension_semantics = [#tpu.dimension_semantics<parallel>], iteration_bounds = array<i64: 3>, scalar_prefetch = 0 : i64, scratch_operands = 0 : i64, tpu.core_type = #tpu.core_type<tc>, window_params = [{transform_indices = @transform_0, window_bounds = array<i64: 128, 128>}, {pipeline_mode = #tpu.pipeline_mode<synchronous>, transform_indices = @transform_1, window_bounds = array<i64: 128, 256>}, {pipeline_mode = #tpu.pipeline_mode<synchronous>, transform_indices = @transform_2, window_bounds = array<i64: 1, 256>}, {pipeline_mode = #tpu.pipeline_mode<synchronous>, transform_indices = @transform_3, window_bounds = array<i64: 256, 768>}, {pipeline_mode = #tpu.pipeline_mode<synchronous>, transform_indices = @transform_4, window_bounds = array<i64: 1, 768>}, {transform_indices = @transform_5, window_bounds = array<i64: 128, 768>}]} {
    %c0 = arith.constant 0 : index
    %c0_0 = arith.constant 0 : index
    %0 = vector.load %arg1[%c0, %c0_0] : memref<128x128xbf16, #tpu.memory_space<vmem>>, vector<128x128xbf16>
    %c0_1 = arith.constant 0 : index
    %c0_2 = arith.constant 0 : index
    %1 = vector.load %arg2[%c0_1, %c0_2] : memref<128x256xbf16, #tpu.memory_space<vmem>>, vector<128x256xbf16>
    %cst = arith.constant dense<0.000000e+00> : vector<128x256xf32>
    %2 = tpu.matmul %0, %1, %cst {dimension_numbers = #tpu.dot_dimension_numbers<[1], [0], [0], [1], [0, 0, 1, 1], [], []>} : vector<128x128xbf16>, vector<128x256xbf16>, vector<128x256xf32> -> vector<128x256xf32>
    %c0_3 = arith.constant 0 : index
    %c0_4 = arith.constant 0 : index
    %3 = vector.load %arg3[%c0_3, %c0_4] : memref<1x256xf32, #tpu.memory_space<vmem>>, vector<1x256xf32>
    %4 = vector.broadcast %3 : vector<1x256xf32> to vector<128x256xf32>
    %5 = arith.addf %2, %4 : vector<128x256xf32>
    %cst_5 = arith.constant 0.000000e+00 : f32
    %6 = vector.broadcast %cst_5 : f32 to vector<128x256xf32>
    %7 = arith.maximumf %5, %6 : vector<128x256xf32>
    %8 = arith.truncf %7 : vector<128x256xf32> to vector<128x256xbf16>
    %c0_6 = arith.constant 0 : index
    %c0_7 = arith.constant 0 : index
    %9 = vector.load %arg4[%c0_6, %c0_7] : memref<256x768xbf16, #tpu.memory_space<vmem>>, vector<256x768xbf16>
    %cst_8 = arith.constant dense<0.000000e+00> : vector<128x768xf32>
    %10 = tpu.matmul %8, %9, %cst_8 {dimension_numbers = #tpu.dot_dimension_numbers<[1], [0], [0], [1], [0, 0, 1, 1], [], []>} : vector<128x256xbf16>, vector<256x768xbf16>, vector<128x768xf32> -> vector<128x768xf32>
    %c0_9 = arith.constant 0 : index
    %c0_10 = arith.constant 0 : index
    %11 = vector.load %arg5[%c0_9, %c0_10] : memref<1x768xf32, #tpu.memory_space<vmem>>, vector<1x768xf32>
    %12 = vector.broadcast %11 : vector<1x768xf32> to vector<128x768xf32>
    %13 = arith.addf %10, %12 : vector<128x768xf32>
    %c0_11 = arith.constant 0 : index
    %c0_12 = arith.constant 0 : index
    %14 = vector.load %arg6[%c0_11, %c0_12] : memref<128x768xf32, #tpu.memory_space<vmem>>, vector<128x768xf32>
    tpu.vector_store %arg6[%c0_11, %c0_12], %13 {strides = array<i32>} : memref<128x768xf32, #tpu.memory_space<vmem>>, vector<128x768xf32>,
    return
  }
  func.func @transform_0(%arg0: i32) -> (i32, i32) {
    %c0_i32 = arith.constant 0 : i32
    %c0_i32_0 = arith.constant 0 : i32
    return %arg0, %c0_i32 : i32, i32
  }
  func.func @transform_1(%arg0: i32) -> (i32, i32) {
    %c0_i32 = arith.constant 0 : i32
    %c0_i32_0 = arith.constant 0 : i32
    %c0_i32_1 = arith.constant 0 : i32
    return %c0_i32, %c0_i32_0 : i32, i32
  }
  func.func @transform_2(%arg0: i32) -> (i32, i32) {
    %c0_i32 = arith.constant 0 : i32
    %c0_i32_0 = arith.constant 0 : i32
    %c0_i32_1 = arith.constant 0 : i32
    return %c0_i32, %c0_i32_0 : i32, i32
  }
  func.func @transform_3(%arg0: i32) -> (i32, i32) {
    %c0_i32 = arith.constant 0 : i32
    %c0_i32_0 = arith.constant 0 : i32
    %c0_i32_1 = arith.constant 0 : i32
    return %c0_i32, %c0_i32_0 : i32, i32
  }
  func.func @transform_4(%arg0: i32) -> (i32, i32) {
    %c0_i32 = arith.constant 0 : i32
    %c0_i32_0 = arith.constant 0 : i32
    %c0_i32_1 = arith.constant 0 : i32
    return %c0_i32, %c0_i32_0 : i32, i32
  }
  func.func @transform_5(%arg0: i32) -> (i32, i32) {
    %c0_i32 = arith.constant 0 : i32
    %c0_i32_0 = arith.constant 0 : i32
    return %arg0, %c0_i32 : i32, i32
  }
}

</mosaic_0001>

<bundles_post_ra>
// kernel: tpu_custom_call.1
= control target key start
LH: loop header
LB: loop body
LE: loop exit
PB: predicated region body
PF: predicated region fallthrough
CT: control target
= control target key end

     0   :  { %10 = vsyncpa [#allocation3], 0  ;;  %s3580_s0 = inlined_call_operand.hbm [shape: bf16[384,128], index: 0, kind: input, shape index: {}]   ;;  %s3581_s1 = inlined_call_operand.hbm [shape: bf16[128,256], index: 1, kind: input, shape index: {}]   ;;  %s3582_s2 = inlined_call_operand.hbm [shape: f32[1,256], index: 2, kind: input, shape index: {}]   ;;  %s3583_s3 = inlined_call_operand.hbm [shape: bf16[256,768], index: 3, kind: input, shape index: {}]   ;;  %s3584_s4 = inlined_call_operand.hbm [shape: f32[1,768], index: 4, kind: input, shape index: {}]   ;;  %s3585_s5 = inlined_call_operand.hbm [shape: f32[384,768], index: 5, kind: output, shape index: {}]  }
   0x1   :  { %12 = vsyncpa [#allocation3 + $0x1], 0 }
   0x2   :  { %13 = vsyncpa [#allocation6], 0 }
   0x3   :  { %14 = vsyncpa [#allocation9], 0 }
   0x4   :  { %15 = vsyncpa [#allocation4], 0 }
   0x5   :  { %17 = vsyncpa [#allocation4 + $0x1], 0  ;;  %s3026_s18 = smov 0   ;;  %s3028_s19 = smov 0  }
   0x6   :  { %s3030_s20 = smov 0   ;;  %s3032_s21 = smov 0  }
   0x7 LB: > { %s3047_s22 = sadd.s32 4294967295, %s2982_s21   ;;  %s2023_s23 = sadd.s32 4294967294, %s2982_s21   ;;  %s2982_s21 = sphi %s3032_s21, %s3595_s21   ;;  %s2978_s20 = sphi %s3030_s20, %s3594_s20   ;;  %s2974_s19 = sphi %s3028_s19, %s3593_s19   ;;  %s2970_s18 = sphi %s3026_s18, %s3592_s18  }
   0x8   : > { %p43_p0 = scmp.ne.s32.totalorder %s2974_s19, %s2970_s18  ;;  %p44_p1 = scmp.eq.s32.totalorder %s3047_s22, 0 }
   0x9   : > { %p151_p2 = scmp.eq.s32.totalorder %s3047_s22, 2  ;;  %p157_p3 = scmp.eq.s32.totalorder %s2023_s23, 2 }
   0xa   : > { %p3056_p4 = por %p44_p1, %p43_p0  ;;  %p2024_p5 = scmp.ge.s32.totalorder %s2982_s21, 1 }
   0xb   : > { %p3061_p6 = por %p157_p3, %p43_p0  ;;  %p164_p7 = scmp.lt.s32.totalorder %s2982_s21, 4 }
   0xc   : > { %s175_s28 = sshll.u32 %s3581_s1, 4  ;;  %s2984_s30 = smov [#allocation5]   ;;  %s176_s28 = int_to_ptr.hbm [resolvable:$true] %s175_s28 }
   0xd   : > { %p3069_p8 = pnand %p2024_p5, %p164_p7  ;;  %s177_s6 = sshll.u32 %s2984_s30, 4  ;;  %s178_s6 = int_to_ptr.vmem [resolvable:$true] %s177_s6 }
   0xe   : > { %s201_s10 = sshll.u32 %s3583_s3, 4  ;;  %s2985_s11 = smov 128   ;;  %s202_s10 = int_to_ptr.hbm [resolvable:$true] %s201_s10 }
   0xf   : > { %p2683_p9 = pneg %p3069_p8  ;;  %s2986_s12 = smov 8  }
  0x10   : > { %s2987_s13 = smov [#allocation8]   ;;  %s2988_s15 = smov 384  }
  0x11   : > { %p3077_p10 = pnand %p2683_p9, %p44_p1  ;;  %s203_s14 = sshll.u32 %s2987_s13, 4  ;;  %s204_s14 = int_to_ptr.vmem [resolvable:$true] %s203_s14 }
  0x12   : > { %s2989_s16 = smov 24   ;;  %s190_s26 = sshll.u32 %s3582_s2, 4  ;;  %s191_s26 = int_to_ptr.hbm [resolvable:$true] %s190_s26 }
  0x13   : > { %2686 = dma.hbm_to_vmem [thread:$0]  (!%p3077_p10), %s176_s28, 2048, %s178_s6, [#allocation6], %s2985_s11, %s2985_s11, %s2986_s12  }
  0x14   : > { %2692 = dma.hbm_to_vmem [thread:$0]  (!%p3077_p10), %s202_s10, 12288, %s204_s14, [#allocation9], %s2988_s15, %s2988_s15, %s2989_s16  }
  0x15   : > { %s2990_s27 = smov [#allocation7]   ;;  %s216_s8 = sshll.u32 %s3584_s4, 4  ;;  %s217_s8 = int_to_ptr.hbm [resolvable:$true] %s216_s8 }
  0x16   : > { %s192_s28 = sshll.u32 %s2990_s27, 4  ;;  %s2991_s9 = smov [#allocation10]   ;;  %s193_s28 = int_to_ptr.vmem [resolvable:$true] %s192_s28 }
  0x17   : > { %2689 = dma.hbm_to_vmem [thread:$0]  (!%p3077_p10), %s191_s26, 32, %s193_s28, [#allocation6]  }
  0x18   : > { %s218_s10 = sshll.u32 %s2991_s9, 4  ;;  %s3099_s11 = sadd.s32 1, %s2982_s21   ;;  %s219_s10 = int_to_ptr.vmem [resolvable:$true] %s218_s10 }
  0x19   : > { %2695 = dma.hbm_to_vmem [thread:$0]  (!%p3077_p10), %s217_s8, 96, %s219_s10, [#allocation9]  }
  0x1a   : > { %s30_s12 = sadd.s32 1, %s2978_s20  ;;  %s27_s13 = ssub.s32 %s2982_s21, %s3099_s11 }
  0x1b   : > { %p37_p11 = scmp.ne.s32.totalorder %s2978_s20, %s2974_s19  ;;  %p28_p12 = scmp.eq.s32.totalorder %s27_s13, 0 }
  0x1c   : > { %p38_p13 = scmp.eq.s32.totalorder %s2982_s21, 0  ;;  %p2708_p3 = scmp.lt.s32.totalorder %s2982_s21, 3 }
  0x1d   : > { %p3109_p0 = por %p151_p2, %p37_p11  ;;  %s229_s16 = sand.u32 1, %s2978_s20  }
  0x1e   : > { %s3115_s15 = scalar_select %p28_p12, %s2978_s20, %s30_s12  }
  0x1f   : > { %p39_p5 = por %p38_p13, %p37_p11  ;;  %s2030_s7 = sshll.u32 %s229_s16, 6 }
  0x20   : > { %s2524_s17 = sshll.u32 %s2982_s21, 6  ;;  %s233_s28 = scalar_lea.vmem [#allocation2], %s2030_s7 }
  0x21   : > { %s238_s27 = scalar_lea.hbm %s3580_s0, %s2524_s17  ;;  %s241_s30 = sshll.u32 %s233_s28, 4  ;;  %s242_s30 = int_to_ptr.vmem [resolvable:$true] %s241_s30 }
  0x22   : > { %s239_s6 = sshll.u32 %s238_s27, 4  ;;  %p3122_p2 = pnand %p2708_p3, %p39_p5  ;;  %s240_s6 = int_to_ptr.hbm [resolvable:$true] %s239_s6 }
  0x23   : > { %s230_s9 = scalar_lea.sflag [#allocation3], %s229_s16  ;;  %s2878_s10 = sshra.s32 %s240_s6, 4  ;;  %s2879_s10 = int_to_ptr.hbm [resolvable:$true] %s2878_s10 }
  0x24   : > { %s2880_s12 = scalar_lea.hbm %s2879_s10, 64  ;;  %p2882_p9 = pneg %p3122_p2 }
  0x25   : > { %p2881_p7 = scmp.ne.s32.totalorder %s2879_s10, %s2880_s12  ;;  %s2885_s17 = scalar_lea.hbm %s3580_s0, 192 }
  0x26   : > { %p2886_p12 = scmp.lt.s32.totalorder %s2879_s10, %s3580_s0  ;;  %p2887_p13 = scmp.lt.s32.totalorder %s2885_s17, %s2880_s12 }
  0x27   : > { %p2883_p10 = pnand %p2882_p9, %p2881_p7 }
  0x28   : > { %p2888_p3 = por %p2887_p13, %p2886_p12 }
  0x29   : > { %p2884_p11 = pneg %p2883_p10 }
  0x2b   : > { %p2889_p5 = pnand %p2888_p3, %p2884_p11 }
  0x2d   : > { %2892 = shalt.err (!%p2889_p5)
}
  0x2e   : > { %s2992_s16 = smov 64   ;;  %s2993_s27 = smov 4  }
  0x2f   : > { %2699 = dma.hbm_to_vmem [thread:$0]  (!%p3122_p2), %s240_s6, 1024, %s242_s30, %s230_s9, %s2992_s16, %s2992_s16, %s2993_s27  }
  0x30   : > { %253 = sbr.rel (%p3069_p8) target bundleno = 748 (0x2ec), region = 40  ;;  %s3139_s28 = sand.u32 (!%p3069_p8), 1, %s2974_s19  }
  0x31   : > { %s2034_s13 = sshll.u32 (!%p3069_p8), %s3139_s28, 6  ;;  %s256_s10 = scalar_lea.sflag (!%p3069_p8), [#allocation3], %s3139_s28 }
  0x32   : > { %s3143_s12 = scalar_lea.vmem (!%p3069_p8), [#allocation2], %s2034_s13 }
  0x35   : > { %2953 = dma.done.wait (%p3056_p4), %s256_s10, 1024  }
  0x36   : > { %2955 = vsyncadd (%p3056_p4), %s256_s10, 4294966272 }
  0x37   : > { %2957 = dma.done.wait (%p44_p1), [#allocation6], 2080  }
  0x38   : > { %2959 = vsyncadd (%p44_p1), [#allocation6], 4294965216 }
  0x39   : > { %2961 = dma.done.wait (%p44_p1), [#allocation9], 12384  }
  0x3a   : > { %2963 = vsyncadd (%p44_p1), [#allocation9], 4294954912  ;;  %v2129_v0 = vld [vmem:[#allocation5 + $0x70] sm:$0xf]  ;;  %v2548_v1 = vld [vmem:[#allocation5 + $0x74] sm:$0xf0] }
  0x3b   : > { %v2547_v2 = vld [vmem:[#allocation5 + $0x74] sm:$0xf]  ;;  %v2130_v3 = vor.u32 %v2548_v1, %v2129_v0  ;;  %v2131_v4 = vld [vmem:[#allocation5 + $0x78] sm:$0xf0]  ;;  %v2121_v5 = vld [vmem:[#allocation5 + $0x60] sm:$0xf] }
  0x3c   : > { %v2546_v6 = vld [vmem:[#allocation5 + $0x64] sm:$0xf0]  ;;  %v2134_v7 = vor.u32 %v2547_v2, %v2131_v4  ;;  %v2545_v8 = vld [vmem:[#allocation5 + $0x64] sm:$0xf]  ;;  %v2123_v9 = vld [vmem:[#allocation5 + $0x68] sm:$0xf0] }
  0x3d   : > { %475 = vmatpush.bf16.msra.mxu0 %v2130_v3  ;;  %v2122_v10 = vor.u32 %v2546_v6, %v2121_v5  ;;  %2645 = vmatpush.bf16.msra.mxu2 %v2130_v3  ;;  %v2126_v11 = vor.u32 %v2545_v8, %v2123_v9  ;;  %v2113_v12 = vld [vmem:[#allocation5 + $0x50] sm:$0xf]  ;;  %v2544_v13 = vld [vmem:[#allocation5 + $0x54] sm:$0xf0]  ;;  %v2543_v14 = vld [vmem:[#allocation5 + $0x54] sm:$0xf] }
  0x3e   : > { %524 = vmatpush.bf16.msra.mxu1 %v2134_v7  ;;  %2653 = vmatpush.bf16.msra.mxu3 %v2134_v7  ;;  %v2115_v15 = vld [vmem:[#allocation5 + $0x58] sm:$0xf0]  ;;  %v2114_v16 = vor.u32 %v2544_v13, %v2113_v12  ;;  %v2105_v18 = vld [vmem:[#allocation5 + $0x40] sm:$0xf]  ;;  %v2542_v19 = vld [vmem:[#allocation5 + $0x44] sm:$0xf0] }
  0x3f   : > { %v2118_v17 = vor.u32 %v2543_v14, %v2115_v15  ;;  %v2541_v20 = vld [vmem:[#allocation5 + $0x44] sm:$0xf]  ;;  %v2107_v21 = vld [vmem:[#allocation5 + $0x48] sm:$0xf0]  ;;  %v2106_v22 = vor.u32 %v2542_v19, %v2105_v18  ;;  %v2097_v24 = vld [vmem:[#allocation5 + $0x30] sm:$0xf] }
  0x40   : > { %v2110_v23 = vor.u32 %v2541_v20, %v2107_v21  ;;  %v2540_v25 = vld [vmem:[#allocation5 + $0x34] sm:$0xf0]  ;;  %v2539_v26 = vld [vmem:[#allocation5 + $0x34] sm:$0xf]  ;;  %v2099_v27 = vld [vmem:[#allocation5 + $0x38] sm:$0xf0] }
  0x41   : > { %476 = vmatpush.bf16.msra.mxu0 %v2122_v10  ;;  %2646 = vmatpush.bf16.msra.mxu2 %v2122_v10  ;;  %v2098_v28 = vor.u32 %v2540_v25, %v2097_v24  ;;  %v2102_v29 = vor.u32 %v2539_v26, %v2099_v27  ;;  %v2089_v30 = vld [vmem:[#allocation5 + $0x20] sm:$0xf]  ;;  %v2538_v31 = vld [vmem:[#allocation5 + $0x24] sm:$0xf0]  ;;  %v2537_v32 = vld [vmem:[#allocation5 + $0x24] sm:$0xf] }
  0x42   : > { %525 = vmatpush.bf16.msra.mxu1 %v2126_v11  ;;  %2654 = vmatpush.bf16.msra.mxu3 %v2126_v11  ;;  %v2091_v33 = vld [vmem:[#allocation5 + $0x28] sm:$0xf0]  ;;  %v2090_v34 = vor.u32 %v2538_v31, %v2089_v30  ;;  %v2081_v36 = vld [vmem:[#allocation5 + $0x10] sm:$0xf]  ;;  %v2536_v37 = vld [vmem:[#allocation5 + $0x14] sm:$0xf0] }
  0x43   : > { %v2094_v35 = vor.u32 %v2537_v32, %v2091_v33  ;;  %v2535_v38 = vld [vmem:[#allocation5 + $0x14] sm:$0xf]  ;;  %v2083_v39 = vld [vmem:[#allocation5 + $0x18] sm:$0xf0]  ;;  %v2082_v40 = vor.u32 %v2536_v37, %v2081_v36  ;;  %v2073_v42 = vld [vmem:[#allocation5] sm:$0xf] }
  0x44   : > { %v2086_v41 = vor.u32 %v2535_v38, %v2083_v39  ;;  %v2534_v43 = vld [vmem:[#allocation5 + $0x4] sm:$0xf0]  ;;  %v2533_v44 = vld [vmem:[#allocation5 + $0x4] sm:$0xf]  ;;  %v2075_v45 = vld [vmem:[#allocation5 + $0x8] sm:$0xf0] }
  0x45   : > { %477 = vmatpush.bf16.msra.mxu0 %v2114_v16  ;;  %2647 = vmatpush.bf16.msra.mxu2 %v2114_v16  ;;  %v2074_v46 = vor.u32 %v2534_v43, %v2073_v42  ;;  %v2078_v47 = vor.u32 %v2533_v44, %v2075_v45  ;;  %v2525_v48 = vld [vmem:[%s3143_s12] sm:$0xff]  ;;  %v2526_v49 = vld [vmem:[%s3143_s12 + $0x8] sm:$0xff]  ;;  %v2305_v51 = vld [vmem:[#allocation8 + $0x150] sm:$0xf]  ;;  %s2661_s24 = smul.u32 768, %s3139_s28  ;;  %s1896_s17 = scalar_lea.sflag [#allocation4], %s3139_s28 }
  0x46   : > { %526 = vmatpush.bf16.msra.mxu1 %v2118_v17  ;;  %2655 = vmatpush.bf16.msra.mxu3 %v2118_v17  ;;  %v2529_v50 = vld [vmem:[%s3143_s12 + $0x20] sm:$0xff]  ;;  %v2594_v52 = vld [vmem:[#allocation8 + $0x164] sm:$0xf0]  ;;  %v2497_v53 = vld [vmem:[#allocation8 + $0x2d0] sm:$0xf]  ;;  %s2662_s30 = smul.u32 768, %s3047_s22 }
  0x47   : > { %v2642_v54 = vld [vmem:[#allocation8 + $0x2e4] sm:$0xf0]  ;;  %v2306_v55 = vor.u32 %v2594_v52, %v2305_v51  ;;  %v2591_v57 = vld [vmem:[#allocation8 + $0x154] sm:$0xf]  ;;  %v2307_v58 = vld [vmem:[#allocation8 + $0x168] sm:$0xf0] }
  0x48   : > { %v2498_v56 = vor.u32 %v2642_v54, %v2497_v53  ;;  %v2310_v59 = vor.u32 %v2591_v57, %v2307_v58  ;;  %v2281_v60 = vld [vmem:[#allocation8 + $0x120] sm:$0xf]  ;;  %v2588_v61 = vld [vmem:[#allocation8 + $0x134] sm:$0xf0]  ;;  %v2639_v62 = vld [vmem:[#allocation8 + $0x2d4] sm:$0xf]  ;;  %s1908_s9 = scalar_lea.hbm %s3585_s5, %s2662_s30 }
  0x49   : > { %478 = vmatpush.bf16.msra.mxu0 %v2106_v22  ;;  %2648 = vmatpush.bf16.msra.mxu2 %v2106_v22  ;;  %v2282_v63 = vor.u32 %v2588_v61, %v2281_v60  ;;  %v2499_v0 = vld [vmem:[#allocation8 + $0x2e8] sm:$0xf0]  ;;  %v2473_v1 = vld [vmem:[#allocation8 + $0x2a0] sm:$0xf]  ;;  %v2636_v2 = vld [vmem:[#allocation8 + $0x2b4] sm:$0xf0] }
  0x4a   : > { %527 = vmatpush.bf16.msra.mxu1 %v2110_v23  ;;  %2656 = vmatpush.bf16.msra.mxu3 %v2110_v23  ;;  %v2502_v3 = vor.u32 %v2639_v62, %v2499_v0  ;;  %v2474_v4 = vor.u32 %v2636_v2, %v2473_v1  ;;  %v2585_v5 = vld [vmem:[#allocation8 + $0x124] sm:$0xf]  ;;  %v2283_v6 = vld [vmem:[#allocation8 + $0x138] sm:$0xf0]  ;;  %v2257_v7 = vld [vmem:[#allocation8 + $0xf0] sm:$0xf] }
  0x4b   : > { %v2286_v8 = vor.u32 %v2585_v5, %v2283_v6  ;;  %v2582_v9 = vld [vmem:[#allocation8 + $0x104] sm:$0xf0]  ;;  %v2633_v10 = vld [vmem:[#allocation8 + $0x2a4] sm:$0xf]  ;;  %v2475_v11 = vld [vmem:[#allocation8 + $0x2b8] sm:$0xf0] }
  0x4c   : > { %v2478_v12 = vor.u32 %v2633_v10, %v2475_v11  ;;  %v2449_v13 = vld [vmem:[#allocation8 + $0x270] sm:$0xf]  ;;  %v2630_v14 = vld [vmem:[#allocation8 + $0x284] sm:$0xf0]  ;;  %v2258_v15 = vor.u32 %v2582_v9, %v2257_v7  ;;  %v2579_v19 = vld [vmem:[#allocation8 + $0xf4] sm:$0xf] }
  0x4d   : > { %479 = vmatpush.bf16.msra.mxu0 %v2098_v28  ;;  %2649 = vmatpush.bf16.msra.mxu2 %v2098_v28  ;;  %v2450_v16 = vor.u32 %v2630_v14, %v2449_v13  ;;  %v2527_v17 = vld [vmem:[%s3143_s12 + $0x10] sm:$0xff]  ;;  %v2530_v18 = vld [vmem:[%s3143_s12 + $0x28] sm:$0xff]  ;;  %v2233_v21 = vld [vmem:[#allocation8 + $0xc0] sm:$0xf]  ;;  %s3282_s29 = scalar_lea.vmem [#allocation11], %s2661_s24  ;;  %s1911_s22 = sshll.u32 %s1908_s9, 4  ;;  %s1912_s22 = int_to_ptr.hbm [resolvable:$true] %s1911_s22 }
  0x4e   : > { %528 = vmatpush.bf16.msra.mxu1 %v2102_v29  ;;  %2657 = vmatpush.bf16.msra.mxu3 %v2102_v29  ;;  %v2259_v20 = vld [vmem:[#allocation8 + $0x108] sm:$0xf0]  ;;  %v2576_v23 = vld [vmem:[#allocation8 + $0xd4] sm:$0xf0]  ;;  %v2627_v24 = vld [vmem:[#allocation8 + $0x274] sm:$0xf] }
  0x4f   : > { %v2262_v22 = vor.u32 %v2579_v19, %v2259_v20  ;;  %v2451_v25 = vld [vmem:[#allocation8 + $0x288] sm:$0xf0]  ;;  %v2234_v26 = vor.u32 %v2576_v23, %v2233_v21  ;;  %v2425_v28 = vld [vmem:[#allocation8 + $0x240] sm:$0xf]  ;;  %v2624_v29 = vld [vmem:[#allocation8 + $0x254] sm:$0xf0] }
  0x50   : > { %v2454_v27 = vor.u32 %v2627_v24, %v2451_v25  ;;  %v2573_v30 = vld [vmem:[#allocation8 + $0xc4] sm:$0xf]  ;;  %v2426_v31 = vor.u32 %v2624_v29, %v2425_v28  ;;  %v2235_v32 = vld [vmem:[#allocation8 + $0xd8] sm:$0xf0]  ;;  %v2209_v33 = vld [vmem:[#allocation8 + $0x90] sm:$0xf] }
  0x51   : > { %480 = vmatpush.bf16.msra.mxu0 %v2090_v34  ;;  %2650 = vmatpush.bf16.msra.mxu2 %v2090_v34  ;;  %v2570_v34 = vld [vmem:[#allocation8 + $0xa4] sm:$0xf0]  ;;  %v2621_v37 = vld [vmem:[#allocation8 + $0x244] sm:$0xf]  ;;  %v2427_v38 = vld [vmem:[#allocation8 + $0x258] sm:$0xf0] }
  0x52   : > { %529 = vmatpush.bf16.msra.mxu1 %v2094_v35  ;;  %2658 = vmatpush.bf16.msra.mxu3 %v2094_v35  ;;  %v2238_v35 = vor.u32 %v2573_v30, %v2235_v32  ;;  %v2210_v36 = vor.u32 %v2570_v34, %v2209_v33  ;;  %v2401_v39 = vld [vmem:[#allocation8 + $0x210] sm:$0xf]  ;;  %v2567_v42 = vld [vmem:[#allocation8 + $0x94] sm:$0xf]  ;;  %v2211_v43 = vld [vmem:[#allocation8 + $0xa8] sm:$0xf0] }
  0x53   : > { %v2185_v45 = vld [vmem:[#allocation8 + $0x60] sm:$0xf]  ;;  %v2612_v51 = vld [vmem:[#allocation8 + $0x1f4] sm:$0xf0]  ;;  %v2561_v54 = vld [vmem:[#allocation8 + $0x64] sm:$0xf] }
  0x54   : > { %v2161_v58 = vld [vmem:[#allocation8 + $0x30] sm:$0xf]  ;;  %v2609_v60 = vld [vmem:[#allocation8 + $0x1e4] sm:$0xf]  ;;  %v2379_v61 = vld [vmem:[#allocation8 + $0x1f8] sm:$0xf0] }
  0x55   : > { %481 = vmatpush.bf16.msra.mxu0 %v2082_v40  ;;  %2651 = vmatpush.bf16.msra.mxu2 %v2082_v40  ;;  %v2430_v40 = vor.u32 %v2621_v37, %v2427_v38  ;;  %v2382_v1 = vor.u32 %v2609_v60, %v2379_v61  ;;  %v2532_v2 = vld [vmem:[%s3143_s12 + $0x38] sm:$0xff]  ;;  %v2163_v7 = vld [vmem:[#allocation8 + $0x48] sm:$0xf0]  ;;  %v2597_v20 = vld [vmem:[#allocation8 + $0x184] sm:$0xf]  ;;  %s1909_s7 = sshll.u32 %s3282_s29, 4  ;;  %s1910_s7 = int_to_ptr.vmem [resolvable:$true] %s1909_s7 }
  0x56   : > { %530 = vmatpush.bf16.msra.mxu1 %v2086_v41  ;;  %2659 = vmatpush.bf16.msra.mxu3 %v2086_v41  ;;  %v2618_v41 = vld [vmem:[#allocation8 + $0x224] sm:$0xf0]  ;;  %v2555_v5 = vld [vmem:[#allocation8 + $0x34] sm:$0xf]  ;;  %v2552_v9 = vld [vmem:[#allocation8 + $0x14] sm:$0xf0] }
  0x57   : > { %v2402_v44 = vor.u32 %v2618_v41, %v2401_v39  ;;  %v2166_v10 = vor.u32 %v2555_v5, %v2163_v7  ;;  %v2355_v13 = vld [vmem:[#allocation8 + $0x1c8] sm:$0xf0]  ;;  %v2139_v19 = vld [vmem:[#allocation8 + $0x18] sm:$0xf0]  ;;  %v2313_v24 = vld [vmem:[#allocation8 + $0x158] sm:$0xf] }
  0x58   : > { %v2331_v21 = vld [vmem:[#allocation8 + $0x198] sm:$0xf0]  ;;  %v2595_v25 = vld [vmem:[#allocation8 + $0x16c] sm:$0xf0]  ;;  %v2507_v33 = vld [vmem:[#allocation8 + $0x2f0] sm:$0xf0] }
  0x59   : > { %482 = vmatpush.bf16.msra.mxu0 %v2074_v46  ;;  %2652 = vmatpush.bf16.msra.mxu2 %v2074_v46  ;;  %v2564_v46 = vld [vmem:[#allocation8 + $0x74] sm:$0xf0]  ;;  %v2334_v23 = vor.u32 %v2597_v20, %v2331_v21  ;;  %v2643_v28 = vld [vmem:[#allocation8 + $0x2ec] sm:$0xf0]  ;;  %v2592_v29 = vld [vmem:[#allocation8 + $0x15c] sm:$0xf] }
  0x5a   : > { %531 = vmatpush.bf16.msra.mxu1 %v2078_v47  ;;  %2660 = vmatpush.bf16.msra.mxu3 %v2078_v47  ;;  %v2615_v47 = vld [vmem:[#allocation8 + $0x214] sm:$0xf]  ;;  %v2186_v52 = vor.u32 %v2564_v46, %v2185_v45  ;;  %v2640_v32 = vld [vmem:[#allocation8 + $0x2dc] sm:$0xf]  ;;  %v2289_v38 = vld [vmem:[#allocation8 + $0x128] sm:$0xf] }
  0x5b   : > { %v2589_v39 = vld [vmem:[#allocation8 + $0x13c] sm:$0xf0]  ;;  %v2631_v7 = vld [vmem:[#allocation8 + $0x28c] sm:$0xf0]  ;;  %s2922_s23 = sshra.s32 %s1912_s22, 4  ;;  %s2928_s13 = scalar_lea.hbm %s3585_s5, 2304  ;;  %s2923_s23 = int_to_ptr.hbm [resolvable:$true] %s2922_s23 }
  0x5c   : > { %483 = vmatmul.bf16.vlgmr.msra.gmra.mxu0 %v2525_v48  ;;  %503 = vmatmul.bf16.vlgmr.msra.gmra.mxu2 %v2529_v50  ;;  %v2290_v41 = vor.u32 %v2589_v39, %v2289_v38  ;;  %v2637_v45 = vld [vmem:[#allocation8 + $0x2bc] sm:$0xf0]  ;;  %v2435_v38 = vld [vmem:[#allocation8 + $0x260] sm:$0xf0]  ;;  %s2924_s26 = scalar_lea.hbm %s2923_s23, 768  ;;  %p2929_p2 = scmp.lt.s32.totalorder %s2923_s23, %s3585_s5 }
  0x5d   : > { %532 = vmatmul.bf16.vlgmr.msra.gmra.mxu1 %v2525_v48  ;;  %552 = vmatmul.bf16.vlgmr.msra.gmra.mxu3 %v2529_v50  ;;  %v2214_v48 = vor.u32 %v2567_v42, %v2211_v43  ;;  %v2377_v50 = vld [vmem:[#allocation8 + $0x1e0] sm:$0xf]  ;;  %p2925_p1 = scmp.ne.s32.totalorder %s2923_s23, %s2924_s26  ;;  %p2930_p7 = scmp.lt.s32.totalorder %s2928_s13, %s2924_s26 }
  0x5e   : > { %1211 = vmatpush.bf16.msrb.mxu2 %v2306_v55  ;;  %1260 = vmatpush.bf16.msrb.mxu3 %v2498_v56  ;;  %v2187_v55 = vld [vmem:[#allocation8 + $0x78] sm:$0xf0]  ;;  %v2378_v57 = vor.u32 %v2612_v51, %v2377_v50  ;;  %v2483_v51 = vld [vmem:[#allocation8 + $0x2c0] sm:$0xf0] }
  0x5f   : > { %1309 = vmatpush.bf16.msrb.mxu0 %v2310_v59  ;;  %1358 = vmatpush.bf16.msrb.mxu1 %v2502_v3  ;;  %v2528_v56 = vld [vmem:[%s3143_s12 + $0x18] sm:$0xff]  ;;  %v2558_v59 = vld [vmem:[#allocation8 + $0x44] sm:$0xf0]  ;;  %v2190_v62 = vor.u32 %v2561_v54, %v2187_v55  ;;  %v2353_v3 = vld [vmem:[#allocation8 + $0x1b0] sm:$0xf]  ;;  %p2926_p4 = pnand %p2925_p1, %p3109_p0  ;;  %p2931_p9 = por %p2930_p7, %p2929_p2 }
  0x60   : > { %v2162_v0 = vor.u32 %v2558_v59, %v2161_v58 }
  0x61   : > { %p2927_p8 = pneg %p2926_p4 }
  0x62   : > { %1212 = vmatpush.bf16.msrb.mxu2 %v2282_v63  ;;  %1261 = vmatpush.bf16.msrb.mxu3 %v2474_v4  ;;  %v2531_v63 = vld [vmem:[%s3143_s12 + $0x30] sm:$0xff]  ;;  %v2606_v4 = vld [vmem:[#allocation8 + $0x1c4] sm:$0xf0] }
  0x63   : > { %1310 = vmatpush.bf16.msrb.mxu0 %v2286_v8  ;;  %1359 = vmatpush.bf16.msrb.mxu1 %v2478_v12  ;;  %v2354_v6 = vor.u32 %v2606_v4, %v2353_v3  ;;  %v2137_v8 = vld [vmem:[#allocation8] sm:$0xf]  ;;  %v2603_v12 = vld [vmem:[#allocation8 + $0x1b4] sm:$0xf]  ;;  %v2583_v3 = vld [vmem:[#allocation8 + $0x10c] sm:$0xf0]  ;;  %p2932_p10 = pnand %p2931_p9, %p2927_p8 }
  0x64   : > { %v2138_v11 = vor.u32 %v2552_v9, %v2137_v8  ;;  %v2358_v14 = vor.u32 %v2603_v12, %v2355_v13  ;;  %v2580_v9 = vld [vmem:[#allocation8 + $0xfc] sm:$0xf]  ;;  %v2459_v13 = vld [vmem:[#allocation8 + $0x290] sm:$0xf0] }
  0x66   : > { %1213 = vmatpush.bf16.msrb.mxu2 %v2258_v15  ;;  %1262 = vmatpush.bf16.msrb.mxu3 %v2450_v16  ;;  %v2329_v15 = vld [vmem:[#allocation8 + $0x180] sm:$0xf]  ;;  %v2600_v16 = vld [vmem:[#allocation8 + $0x194] sm:$0xf0] }
  0x67   : > { %1311 = vmatpush.bf16.msrb.mxu0 %v2262_v22  ;;  %1360 = vmatpush.bf16.msrb.mxu1 %v2454_v27  ;;  %v2505_v27 = vld [vmem:[#allocation8 + $0x2d8] sm:$0xf] }
  0x68   : > { %v2506_v30 = vor.u32 %v2643_v28, %v2505_v27  ;;  %v2241_v28 = vld [vmem:[#allocation8 + $0xc8] sm:$0xf] }
  0x6a   : > { %1214 = vmatpush.bf16.msrb.mxu2 %v2234_v26  ;;  %1263 = vmatpush.bf16.msrb.mxu3 %v2426_v31  ;;  %v2314_v26 = vor.u32 %v2595_v25, %v2313_v24  ;;  %v2315_v31 = vld [vmem:[#allocation8 + $0x170] sm:$0xf0] }
  0x6b   : > { %1312 = vmatpush.bf16.msrb.mxu0 %v2238_v35  ;;  %1361 = vmatpush.bf16.msrb.mxu1 %v2430_v40  ;;  %v2318_v34 = vor.u32 %v2592_v29, %v2315_v31  ;;  %v2510_v35 = vor.u32 %v2640_v32, %v2507_v33  ;;  %v2577_v29 = vld [vmem:[#allocation8 + $0xdc] sm:$0xf0]  ;;  %v2433_v32 = vld [vmem:[#allocation8 + $0x248] sm:$0xf] }
  0x6c   : > { %488 = vmatmul.bf16.gmra.mxu0 %v2526_v49  ;;  %508 = vmatmul.bf16.gmra.mxu2 %v2530_v18  ;;  %v2242_v31 = vor.u32 %v2577_v29, %v2241_v28  ;;  %v2625_v33 = vld [vmem:[#allocation8 + $0x25c] sm:$0xf0]  ;;  %v2385_v28 = vld [vmem:[#allocation8 + $0x1e8] sm:$0xf] }
  0x6d   : > { %537 = vmatmul.bf16.gmra.mxu1 %v2526_v49  ;;  %557 = vmatmul.bf16.gmra.mxu3 %v2530_v18  ;;  %v2403_v49 = vld [vmem:[#allocation8 + $0x228] sm:$0xf0]  ;;  %v2330_v18 = vor.u32 %v2600_v16, %v2329_v15 }
  0x6e   : > { %1215 = vmatpush.bf16.msrb.mxu2 %v2210_v36  ;;  %v2406_v53 = vor.u32 %v2615_v47, %v2403_v49  ;;  %1264 = vmatpush.bf16.msrb.mxu3 %v2402_v44  ;;  %v341_v36 = vld [vmem:[#allocation7] sm:$0x3]  ;;  %v2481_v44 = vld [vmem:[#allocation8 + $0x2a8] sm:$0xf]  ;;  %v2586_v47 = vld [vmem:[#allocation8 + $0x12c] sm:$0xf] }
  0x6f   : > { %1313 = vmatpush.bf16.msrb.mxu0 %v2214_v48  ;;  %v3165_v42 = vperm.slane %v341_v36, 0  ;;  %v3167_v43 = vperm.slane %v341_v36, 1  ;;  %v2482_v46 = vor.u32 %v2637_v45, %v2481_v44  ;;  %v2291_v48 = vld [vmem:[#allocation8 + $0x140] sm:$0xf0]  ;;  %v2634_v49 = vld [vmem:[#allocation8 + $0x2ac] sm:$0xf] }
  0x70   : > { %1362 = vmatpush.bf16.msrb.mxu1 %v2406_v53  ;;  %v2294_v50 = vor.u32 %v2586_v47, %v2291_v48  ;;  %v2486_v53 = vor.u32 %v2634_v49, %v2483_v51  ;;  %v2243_v36 = vld [vmem:[#allocation8 + $0xe0] sm:$0xf0] }
  0x72   : > { %1216 = vmatpush.bf16.msrb.mxu2 %v2186_v52  ;;  %1265 = vmatpush.bf16.msrb.mxu3 %v2378_v57 }
  0x73   : > { %1314 = vmatpush.bf16.msrb.mxu0 %v2190_v62 }
  0x74   : > { %1363 = vmatpush.bf16.msrb.mxu1 %v2382_v1 }
  0x76   : > { %1217 = vmatpush.bf16.msrb.mxu2 %v2162_v0  ;;  %1266 = vmatpush.bf16.msrb.mxu3 %v2354_v6  ;;  %v2457_v6 = vld [vmem:[#allocation8 + $0x278] sm:$0xf] }
  0x77   : > { %1315 = vmatpush.bf16.msrb.mxu0 %v2166_v10  ;;  %v2458_v8 = vor.u32 %v2631_v7, %v2457_v6  ;;  %v2267_v10 = vld [vmem:[#allocation8 + $0x110] sm:$0xf0]  ;;  %v2616_v6 = vld [vmem:[#allocation8 + $0x21c] sm:$0xf] }
  0x78   : > { %1364 = vmatpush.bf16.msrb.mxu1 %v2358_v14  ;;  %v2270_v12 = vor.u32 %v2580_v9, %v2267_v10  ;;  %v2411_v7 = vld [vmem:[#allocation8 + $0x230] sm:$0xf0] }
  0x7a   : > { %1218 = vmatpush.bf16.msrb.mxu2 %v2138_v11  ;;  %1267 = vmatpush.bf16.msrb.mxu3 %v2330_v18  ;;  %v2628_v11 = vld [vmem:[#allocation8 + $0x27c] sm:$0xf] }
  0x7b   : > { %v2462_v15 = vor.u32 %v2628_v11, %v2459_v13 }
  0x7c   : > { %493 = vmatmul.bf16.gmra.mxu0 %v2527_v17  ;;  %513 = vmatmul.bf16.gmra.mxu2 %v2531_v63 }
  0x7d   : > { %542 = vmatmul.bf16.gmra.mxu1 %v2527_v17  ;;  %562 = vmatmul.bf16.gmra.mxu3 %v2531_v63  ;;  %v2549_v17 = vld [vmem:[#allocation8 + $0x4] sm:$0xf] }
  0x7e   : > { %v2142_v22 = vor.u32 %v2549_v17, %v2139_v19  ;;  %1365 = vmatpush.bf16.msrb.mxu1 %v2334_v23  ;;  %1407 = vmatpush.bf16.msra.mxu2 %v2314_v26 }
  0x7f   : > { %1456 = vmatpush.bf16.msra.mxu3 %v2506_v30 }
  0x80   : > { %1316 = vmatpush.bf16.msrb.mxu0 %v2142_v22 }
  0x82   : > { %1554 = vmatpush.bf16.msra.mxu1 %v2510_v35  ;;  %1408 = vmatpush.bf16.msra.mxu2 %v2290_v41  ;;  %v2434_v35 = vor.u32 %v2625_v33, %v2433_v32  ;;  %v2562_v32 = vld [vmem:[#allocation8 + $0x6c] sm:$0xf]  ;;  %v2195_v33 = vld [vmem:[#allocation8 + $0x80] sm:$0xf0] }
  0x83   : > { %1457 = vmatpush.bf16.msra.mxu3 %v2482_v46 }
  0x84   : > { %1505 = vmatpush.bf16.msra.mxu0 %v2318_v34  ;;  %v2574_v34 = vld [vmem:[#allocation8 + $0xcc] sm:$0xf] }
  0x85   : > { %v2246_v39 = vor.u32 %v2574_v34, %v2243_v36  ;;  %v2610_v36 = vld [vmem:[#allocation8 + $0x1ec] sm:$0xf] }
  0x86   : > { %1555 = vmatpush.bf16.msra.mxu1 %v2486_v53 }
  0x87   : > { %1458 = vmatpush.bf16.msra.mxu3 %v2458_v8  ;;  %v2414_v8 = vor.u32 %v2616_v6, %v2411_v7 }
  0x88   : > { %1506 = vmatpush.bf16.msra.mxu0 %v2294_v50 }
  0x8a   : > { %1556 = vmatpush.bf16.msra.mxu1 %v2462_v15 }
  0x8b   : > { %1459 = vmatpush.bf16.msra.mxu3 %v2434_v35  ;;  %v2198_v35 = vor.u32 %v2562_v32, %v2195_v33  ;;  %v2598_v32 = vld [vmem:[#allocation8 + $0x18c] sm:$0xf]  ;;  %v2339_v33 = vld [vmem:[#allocation8 + $0x1a0] sm:$0xf0] }
  0x8c   : > { %498 = vmatmul.bf16.gmra.mxu0 %v2528_v56  ;;  %518 = vmatmul.bf16.gmra.mxu2 %v2532_v2 }
  0x8d   : > { %547 = vmatmul.bf16.gmra.mxu1 %v2528_v56  ;;  %567 = vmatmul.bf16.gmra.mxu3 %v2532_v2  ;;  %v2265_v2 = vld [vmem:[#allocation8 + $0xf8] sm:$0xf] }
  0x8e   : > { %v2266_v5 = vor.u32 %v2583_v3, %v2265_v2  ;;  %1507 = vmatpush.bf16.msra.mxu0 %v2270_v12  ;;  %v2568_v2 = vld [vmem:[#allocation8 + $0x9c] sm:$0xf]  ;;  %v2219_v3 = vld [vmem:[#allocation8 + $0xb0] sm:$0xf0] }
  0x90   : > { %1409 = vmatpush.bf16.msra.mxu2 %v2266_v5  ;;  %v2222_v5 = vor.u32 %v2568_v2, %v2219_v3  ;;  %v2604_v2 = vld [vmem:[#allocation8 + $0x1bc] sm:$0xf]  ;;  %v2363_v3 = vld [vmem:[#allocation8 + $0x1d0] sm:$0xf0] }
  0x92   : > { %1508 = vmatpush.bf16.msra.mxu0 %v2246_v39 }
  0x94   : > { %1410 = vmatpush.bf16.msra.mxu2 %v2242_v31  ;;  %v2613_v31 = vld [vmem:[#allocation8 + $0x1fc] sm:$0xf0] }
  0x95   : > { %v2386_v34 = vor.u32 %v2613_v31, %v2385_v28  ;;  %v2550_v28 = vld [vmem:[#allocation8 + $0xc] sm:$0xf] }
  0x96   : > { %1509 = vmatpush.bf16.msra.mxu0 %v2222_v5  ;;  %v2366_v5 = vor.u32 %v2604_v2, %v2363_v3 }
  0x9a   : > { %1510 = vmatpush.bf16.msra.mxu0 %v2198_v35 }
  0xd9   : > { %v484_v37 = vpop.f32.mrf.mxu0 }
  0xda   : > { %v533_v40 = vpop.f32.mrf.mxu1  ;;  %v485_v52 = vadd.f32 %v484_v37, %v3165_v42  ;;  %v2622_v37 = vld [vmem:[#allocation8 + $0x24c] sm:$0xf] }
  0xdb   : > { %v534_v54 = vadd.f32 %v533_v40, %v3167_v43  ;;  %v2438_v40 = vor.u32 %v2622_v37, %v2435_v38  ;;  %v2387_v37 = vld [vmem:[#allocation8 + $0x200] sm:$0xf0] }
  0xdc   : > { %v573_v59 = vmax.f32 %v485_v52, 0.0  ;;  %v2390_v38 = vor.u32 %v2610_v36, %v2387_v37 }
  0xdd   : > { %v574_v61 = vmax.f32 %v534_v54, 0.0  ;;  %1557 = vmatpush.bf16.msra.mxu1 %v2438_v40 }
  0xdf   : > { %v3197_v51 = vpop.f32.mrf.mxu2 }
  0xe0   : > { %v505_v39 = vadd.f32 %v3197_v51, %v3165_v42  ;;  %v2169_v51 = vld [vmem:[#allocation8 + $0x38] sm:$0xf] }
  0xe1   : > { %v486_v55 = vpop.f32.mrf.mxu0  ;;  %1558 = vmatpush.bf16.msra.mxu1 %v2414_v8 }
  0xe2   : > { %v487_v56 = vadd.f32 %v486_v55, %v3165_v42  ;;  %v535_v57 = vpop.f32.mrf.mxu1  ;;  %v553_v55 = vpop.f32.mrf.mxu3 }
  0xe3   : > { %v536_v58 = vadd.f32 %v535_v57, %v3167_v43 }
  0xe4   : > { %v575_v60 = vmax.f32 %v487_v56, 0.0 }
  0xe5   : > { %v576_v62 = vmax.f32 %v536_v58, 0.0  ;;  %v2217_v58 = vld [vmem:[#allocation8 + $0x98] sm:$0xf]  ;;  %1559 = vmatpush.bf16.msra.mxu1 %v2390_v38 }
  0xe6   : > { %v3173_v63 = vpack.c.bf16 %v575_v60, %v573_v59  ;;  %v2571_v59 = vld [vmem:[#allocation8 + $0xac] sm:$0xf0]  ;;  %v2409_v60 = vld [vmem:[#allocation8 + $0x218] sm:$0xf] }
  0xe7   : > { %v3175_v0 = vpack.c.bf16 %v576_v62, %v574_v61  ;;  %v2218_v62 = vor.u32 %v2571_v59, %v2217_v58  ;;  %v506_v9 = vpop.f32.mrf.mxu2  ;;  %v2607_v59 = vld [vmem:[#allocation8 + $0x1cc] sm:$0xf0] }
  0xe8   : > { %1219 = vmatmul.bf16.vlgmr.msrb.gmra.mxu2 %v3173_v63  ;;  %1317 = vmatmul.bf16.vlgmr.msrb.gmra.mxu0 %v3173_v63  ;;  %v507_v40 = vadd.f32 %v506_v9, %v3165_v42 }
  0xe9   : > { %1268 = vmatmul.bf16.vlgmr.msrb.gmra.mxu3 %v3175_v0  ;;  %1366 = vmatmul.bf16.vlgmr.msrb.gmra.mxu1 %v3175_v0  ;;  %v489_v1 = vpop.f32.mrf.mxu0 }
  0xea   : > { %v538_v4 = vpop.f32.mrf.mxu1  ;;  %v490_v14 = vadd.f32 %v489_v1, %v3165_v42  ;;  %v2619_v1 = vld [vmem:[#allocation8 + $0x22c] sm:$0xf0]  ;;  %1411 = vmatpush.bf16.msra.mxu2 %v2218_v62  ;;  %v555_v11 = vpop.f32.mrf.mxu3  ;;  %1560 = vmatpush.bf16.msra.mxu1 %v2366_v5  ;;  %v2593_v5 = vld [vmem:[#allocation8 + $0x164] sm:$0xf] }
  0xeb   : > { %v539_v16 = vadd.f32 %v538_v4, %v3167_v43  ;;  %v2410_v4 = vor.u32 %v2619_v1, %v2409_v60  ;;  %v2556_v60 = vld [vmem:[#allocation8 + $0x3c] sm:$0xf] }
  0xec   : > { %v577_v21 = vmax.f32 %v490_v14, 0.0 }
  0xed   : > { %v578_v23 = vmax.f32 %v539_v16, 0.0  ;;  %1460 = vmatpush.bf16.msra.mxu3 %v2410_v4 }
  0xf1   : > { %v491_v17 = vpop.f32.mrf.mxu0  ;;  %1461 = vmatpush.bf16.msra.mxu3 %v2386_v34  ;;  %v2342_v34 = vor.u32 %v2598_v32, %v2339_v33 }
  0xf2   : > { %v492_v18 = vadd.f32 %v491_v17, %v3165_v42  ;;  %v540_v19 = vpop.f32.mrf.mxu1  ;;  %v558_v29 = vpop.f32.mrf.mxu3 }
  0xf3   : > { %v541_v20 = vadd.f32 %v540_v19, %v3167_v43  ;;  %v559_v9 = vadd.f32 %v558_v29, %v3167_v43  ;;  %v2147_v29 = vld [vmem:[#allocation8 + $0x20] sm:$0xf0]  ;;  %1561 = vmatpush.bf16.msra.mxu1 %v2342_v34 }
  0xf4   : > { %v579_v22 = vmax.f32 %v492_v18, 0.0  ;;  %v2150_v31 = vor.u32 %v2550_v28, %v2147_v29  ;;  %v2299_v28 = vld [vmem:[#allocation8 + $0x148] sm:$0xf0]  ;;  %v2635_v29 = vld [vmem:[#allocation8 + $0x2b4] sm:$0xf] }
  0xf5   : > { %v580_v24 = vmax.f32 %v541_v20, 0.0 }
  0xf6   : > { %v3185_v25 = vpack.c.bf16 %v579_v22, %v577_v21 }
  0xf7   : > { %v3187_v26 = vpack.c.bf16 %v580_v24, %v578_v23  ;;  %v509_v23 = vpop.f32.mrf.mxu2  ;;  %v2193_v24 = vld [vmem:[#allocation8 + $0x68] sm:$0xf] }
  0xf8   : > { %1224 = vmatmul.bf16.gmra.mxu2 %v3185_v25  ;;  %1322 = vmatmul.bf16.gmra.mxu0 %v3185_v25  ;;  %v510_v6 = vadd.f32 %v509_v23, %v3165_v42  ;;  %v2337_v23 = vld [vmem:[#allocation8 + $0x188] sm:$0xf] }
  0xf9   : > { %1273 = vmatmul.bf16.gmra.mxu3 %v3187_v26  ;;  %1371 = vmatmul.bf16.gmra.mxu1 %v3187_v26  ;;  %v494_v27 = vpop.f32.mrf.mxu0 }
  0xfa   : > { %v543_v30 = vpop.f32.mrf.mxu1  ;;  %v495_v41 = vadd.f32 %v494_v27, %v3165_v42  ;;  %v2565_v27 = vld [vmem:[#allocation8 + $0x7c] sm:$0xf0] }
  0xfb   : > { %v544_v44 = vadd.f32 %v543_v30, %v3167_v43  ;;  %v2194_v30 = vor.u32 %v2565_v27, %v2193_v24  ;;  %v2601_v27 = vld [vmem:[#allocation8 + $0x19c] sm:$0xf0] }
  0xfc   : > { %v581_v49 = vmax.f32 %v495_v41, 0.0  ;;  %v554_v41 = vadd.f32 %v553_v55, %v3167_v43  ;;  %v2559_v55 = vld [vmem:[#allocation8 + $0x4c] sm:$0xf0] }
  0xfd   : > { %v582_v52 = vmax.f32 %v544_v44, 0.0  ;;  %1412 = vmatpush.bf16.msra.mxu2 %v2194_v30  ;;  %v556_v44 = vadd.f32 %v555_v11, %v3167_v43  ;;  %v2170_v58 = vor.u32 %v2559_v55, %v2169_v51  ;;  %v593_v11 = vmax.f32 %v510_v6, 0.0  ;;  %v2596_v51 = vld [vmem:[#allocation8 + $0x174] sm:$0xf0]  ;;  %v2513_v55 = vld [vmem:[#allocation8 + $0x2e0] sm:$0xf] }
  0xfe   : > { %v2338_v30 = vor.u32 %v2601_v27, %v2337_v23  ;;  %v2323_v6 = vld [vmem:[#allocation8 + $0x178] sm:$0xf0]  ;;  %v3268_v23 = vld [vmem:[#allocation10] sm:$0x3f]  ;;  %v2587_v27 = vld [vmem:[#allocation8 + $0x134] sm:$0xf] }
 0x101   : > { %v496_v45 = vpop.f32.mrf.mxu0  ;;  %1413 = vmatpush.bf16.msra.mxu2 %v2170_v58  ;;  %v2644_v58 = vld [vmem:[#allocation8 + $0x2f4] sm:$0xf0] }
 0x102   : > { %v497_v46 = vadd.f32 %v496_v45, %v3165_v42  ;;  %v545_v47 = vpop.f32.mrf.mxu1  ;;  %v589_v45 = vmax.f32 %v505_v39, 0.0 }
 0x103   : > { %v546_v48 = vadd.f32 %v545_v47, %v3167_v43  ;;  %v511_v47 = vpop.f32.mrf.mxu2 }
 0x104   : > { %v583_v50 = vmax.f32 %v497_v46, 0.0  ;;  %v591_v46 = vmax.f32 %v507_v40, 0.0  ;;  %v512_v7 = vadd.f32 %v511_v47, %v3165_v42 }
 0x105   : > { %v584_v53 = vmax.f32 %v546_v48, 0.0  ;;  %v590_v48 = vmax.f32 %v554_v41, 0.0 }
 0x106   : > { %v3199_v54 = vpack.c.bf16 %v583_v50, %v581_v49  ;;  %v592_v49 = vmax.f32 %v556_v44, 0.0  ;;  %v560_v50 = vpop.f32.mrf.mxu3 }
 0x107   : > { %v3201_v56 = vpack.c.bf16 %v584_v53, %v582_v52  ;;  %v3224_v52 = vpack.c.bf16 %v591_v46, %v589_v45 }
 0x108   : > { %1229 = vmatmul.bf16.gmra.mxu2 %v3199_v54  ;;  %1327 = vmatmul.bf16.gmra.mxu0 %v3199_v54  ;;  %v3226_v53 = vpack.c.bf16 %v592_v49, %v590_v48 }
 0x109   : > { %1278 = vmatmul.bf16.gmra.mxu3 %v3201_v56  ;;  %1376 = vmatmul.bf16.gmra.mxu1 %v3201_v56  ;;  %v499_v57 = vpop.f32.mrf.mxu0 }
 0x10a   : > { %v548_v61 = vpop.f32.mrf.mxu1  ;;  %v500_v10 = vadd.f32 %v499_v57, %v3165_v42  ;;  %v2361_v57 = vld [vmem:[#allocation8 + $0x1b8] sm:$0xf] }
 0x10b   : > { %v549_v12 = vadd.f32 %v548_v61, %v3167_v43  ;;  %v2171_v61 = vld [vmem:[#allocation8 + $0x50] sm:$0xf0]  ;;  %v2362_v62 = vor.u32 %v2607_v59, %v2361_v57  ;;  %v514_v4 = vpop.f32.mrf.mxu2 }
 0x10c   : > { %v585_v17 = vmax.f32 %v500_v10, 0.0  ;;  %v2174_v1 = vor.u32 %v2556_v60, %v2171_v61  ;;  %v561_v10 = vadd.f32 %v560_v50, %v3167_v43  ;;  %v515_v35 = vadd.f32 %v514_v4, %v3165_v42  ;;  %v2321_v50 = vld [vmem:[#allocation8 + $0x160] sm:$0xf] }
 0x10d   : > { %v586_v19 = vmax.f32 %v549_v12, 0.0  ;;  %1462 = vmatpush.bf16.msra.mxu3 %v2362_v62  ;;  %v595_v12 = vmax.f32 %v512_v7, 0.0  ;;  %v2322_v57 = vor.u32 %v2596_v51, %v2321_v50  ;;  %v2514_v60 = vor.u32 %v2644_v58, %v2513_v55  ;;  %v2641_v7 = vld [vmem:[#allocation8 + $0x2e4] sm:$0xf] }
 0x10e   : > { %1511 = vmatpush.bf16.msra.mxu0 %v2174_v1  ;;  %v563_v8 = vpop.f32.mrf.mxu3  ;;  %v597_v40 = vmax.f32 %v515_v35, 0.0 }
 0x10f   : > { %v564_v37 = vadd.f32 %v563_v8, %v3167_v43 }
 0x111   : > { %v501_v13 = vpop.f32.mrf.mxu0  ;;  %1463 = vmatpush.bf16.msra.mxu3 %v2338_v30  ;;  %v598_v45 = vmax.f32 %v564_v37, 0.0  ;;  %v2302_v30 = vor.u32 %v2587_v27, %v2299_v28  ;;  %v3278_v37 = vperm.slane %v3268_v23, 0 }
 0x112   : > { %v502_v14 = vadd.f32 %v501_v13, %v3165_v42  ;;  %v550_v15 = vpop.f32.mrf.mxu1  ;;  %v594_v13 = vmax.f32 %v559_v9, 0.0  ;;  %1512 = vmatpush.bf16.msra.mxu0 %v2150_v31  ;;  %v2491_v31 = vld [vmem:[#allocation8 + $0x2c8] sm:$0xf0] }
 0x113   : > { %v551_v16 = vadd.f32 %v550_v15, %v3167_v43  ;;  %v3236_v15 = vpack.c.bf16 %v595_v12, %v593_v11  ;;  %v2515_v11 = vld [vmem:[#allocation8 + $0x2f8] sm:$0xf0]  ;;  %v2494_v32 = vor.u32 %v2635_v29, %v2491_v31 }
 0x114   : > { %v587_v18 = vmax.f32 %v502_v14, 0.0  ;;  %v596_v14 = vmax.f32 %v561_v10, 0.0  ;;  %v2326_v10 = vor.u32 %v2593_v5, %v2323_v6  ;;  %v2518_v12 = vor.u32 %v2641_v7, %v2515_v11 }
 0x115   : > { %v588_v20 = vmax.f32 %v551_v16, 0.0  ;;  %v516_v16 = vpop.f32.mrf.mxu2  ;;  %1652 = vmatpush.bf16.msrb.mxu3 %v2514_v60  ;;  %v2581_v60 = vld [vmem:[#allocation8 + $0x104] sm:$0xf] }
 0x116   : > { %v3211_v21 = vpack.c.bf16 %v587_v18, %v585_v17  ;;  %v3238_v17 = vpack.c.bf16 %v596_v14, %v594_v13  ;;  %v565_v18 = vpop.f32.mrf.mxu3  ;;  %v517_v36 = vadd.f32 %v516_v16, %v3165_v42  ;;  %1701 = vmatpush.bf16.msrb.mxu0 %v2326_v10  ;;  %1750 = vmatpush.bf16.msrb.mxu1 %v2518_v12  ;;  %v2590_v14 = vld [vmem:[#allocation8 + $0x144] sm:$0xf0]  ;;  %v2489_v16 = vld [vmem:[#allocation8 + $0x2b0] sm:$0xf] }
 0x117   : > { %v3213_v22 = vpack.c.bf16 %v588_v20, %v586_v19  ;;  %v2145_v19 = vld [vmem:[#allocation8 + $0x8] sm:$0xf]  ;;  %v2553_v20 = vld [vmem:[#allocation8 + $0x1c] sm:$0xf0]  ;;  %v566_v38 = vadd.f32 %v565_v18, %v3167_v43  ;;  %v2249_v12 = vld [vmem:[#allocation8 + $0xd0] sm:$0xf] }
 0x118   : > { %1234 = vmatmul.bf16.gmra.mxu2 %v3211_v21  ;;  %1332 = vmatmul.bf16.gmra.mxu0 %v3211_v21  ;;  %v2146_v24 = vor.u32 %v2553_v20, %v2145_v19  ;;  %v599_v41 = vmax.f32 %v517_v36, 0.0  ;;  %v2638_v19 = vld [vmem:[#allocation8 + $0x2c4] sm:$0xf0] }
 0x119   : > { %1283 = vmatmul.bf16.gmra.mxu3 %v3213_v22  ;;  %1381 = vmatmul.bf16.gmra.mxu1 %v3213_v22  ;;  %v600_v46 = vmax.f32 %v566_v38, 0.0  ;;  %v2490_v20 = vor.u32 %v2638_v19, %v2489_v16  ;;  %v2273_v38 = vld [vmem:[#allocation8 + $0x100] sm:$0xf]  ;;  %v2626_v19 = vld [vmem:[#allocation8 + $0x264] sm:$0xf0] }
 0x11a   : > { %1414 = vmatpush.bf16.msra.mxu2 %v2146_v24  ;;  %v3248_v47 = vpack.c.bf16 %v599_v41, %v597_v40  ;;  %v3271_v24 = vperm.slane %v3268_v23, 1  ;;  %1702 = vmatpush.bf16.msrb.mxu0 %v2302_v30 }
 0x11b   : > { %v3250_v48 = vpack.c.bf16 %v600_v46, %v598_v45  ;;  %1653 = vmatpush.bf16.msrb.mxu3 %v2490_v20  ;;  %1751 = vmatpush.bf16.msrb.mxu1 %v2494_v32  ;;  %v2632_v45 = vld [vmem:[#allocation8 + $0x294] sm:$0xf0] }
 0x11d   : > { %v519_v39 = vpop.f32.mrf.mxu2 }
 0x11e   : > { %v568_v44 = vpop.f32.mrf.mxu3  ;;  %v520_v61 = vadd.f32 %v519_v39, %v3165_v42  ;;  %1603 = vmatpush.bf16.msrb.mxu2 %v2322_v57  ;;  %v2584_v39 = vld [vmem:[#allocation8 + $0x114] sm:$0xf0] }
 0x11f   : > { %v569_v1 = vadd.f32 %v568_v44, %v3167_v43  ;;  %v2274_v41 = vor.u32 %v2584_v39, %v2273_v38  ;;  %v2465_v44 = vld [vmem:[#allocation8 + $0x280] sm:$0xf]  ;;  %v2623_v39 = vld [vmem:[#allocation8 + $0x254] sm:$0xf] }
 0x120   : > { %v601_v3 = vmax.f32 %v520_v61, 0.0  ;;  %v2466_v50 = vor.u32 %v2632_v45, %v2465_v44  ;;  %v2275_v61 = vld [vmem:[#allocation8 + $0x118] sm:$0xf0] }
 0x121   : > { %v602_v8 = vmax.f32 %v569_v1, 0.0  ;;  %v2278_v1 = vor.u32 %v2581_v60, %v2275_v61  ;;  %v2417_v61 = vld [vmem:[#allocation8 + $0x220] sm:$0xf] }
 0x122   : > { %1654 = vmatpush.bf16.msrb.mxu3 %v2466_v50 }
 0x123   : > { %1703 = vmatpush.bf16.msrb.mxu0 %v2278_v1 }
 0x125   : > { %v521_v49 = vpop.f32.mrf.mxu2 }
 0x126   : > { %v570_v59 = vpop.f32.mrf.mxu3  ;;  %v522_v62 = vadd.f32 %v521_v49, %v3165_v42 }
 0x127   : > { %v571_v2 = vadd.f32 %v570_v59, %v3167_v43  ;;  %v2297_v43 = vld [vmem:[#allocation8 + $0x130] sm:$0xf] }
 0x128   : > { %1239 = vmatmul.bf16.gmra.mxu2 %v3224_v52  ;;  %1337 = vmatmul.bf16.gmra.mxu0 %v3224_v52  ;;  %v603_v4 = vmax.f32 %v522_v62, 0.0  ;;  %v2298_v18 = vor.u32 %v2590_v14, %v2297_v43  ;;  %v2578_v43 = vld [vmem:[#allocation8 + $0xe4] sm:$0xf0] }
 0x129   : > { %1288 = vmatmul.bf16.gmra.mxu3 %v3226_v53  ;;  %1386 = vmatmul.bf16.gmra.mxu1 %v3226_v53  ;;  %v604_v9 = vmax.f32 %v571_v2, 0.0  ;;  %v2629_v2 = vld [vmem:[#allocation8 + $0x284] sm:$0xf]  ;;  %v2250_v16 = vor.u32 %v2578_v43, %v2249_v12 }
 0x12a   : > { %v3260_v13 = vpack.c.bf16 %v603_v4, %v601_v3  ;;  %1604 = vmatpush.bf16.msrb.mxu2 %v2298_v18  ;;  %v2467_v3 = vld [vmem:[#allocation8 + $0x298] sm:$0xf0]  ;;  %v2441_v18 = vld [vmem:[#allocation8 + $0x250] sm:$0xf]  ;;  %v2617_v43 = vld [vmem:[#allocation8 + $0x224] sm:$0xf] }
 0x12b   : > { %v3262_v42 = vpack.c.bf16 %v604_v9, %v602_v8  ;;  %v2470_v6 = vor.u32 %v2629_v2, %v2467_v3  ;;  %v2442_v28 = vor.u32 %v2626_v19, %v2441_v18 }
 0x12d   : > { %1752 = vmatpush.bf16.msrb.mxu1 %v2470_v6  ;;  %1655 = vmatpush.bf16.msrb.mxu3 %v2442_v28 }
 0x12e   : > { %1605 = vmatpush.bf16.msrb.mxu2 %v2274_v41 }
 0x132   : > { %1606 = vmatpush.bf16.msrb.mxu2 %v2250_v16 }
 0x138   : > { %1244 = vmatmul.bf16.gmra.mxu2 %v3236_v15  ;;  %1342 = vmatmul.bf16.gmra.mxu0 %v3236_v15 }
 0x139   : > { %1293 = vmatmul.bf16.gmra.mxu3 %v3238_v17  ;;  %1391 = vmatmul.bf16.gmra.mxu1 %v3238_v17 }
 0x148   : > { %1249 = vmatmul.bf16.gmra.mxu2 %v3248_v47  ;;  %1347 = vmatmul.bf16.gmra.mxu0 %v3248_v47 }
 0x149   : > { %1298 = vmatmul.bf16.gmra.mxu3 %v3250_v48  ;;  %1396 = vmatmul.bf16.gmra.mxu1 %v3250_v48 }
 0x158   : > { %1254 = vmatmul.bf16.gmra.mxu2 %v3260_v13  ;;  %1352 = vmatmul.bf16.gmra.mxu0 %v3260_v13 }
 0x159   : > { %1303 = vmatmul.bf16.gmra.mxu3 %v3262_v42  ;;  %1401 = vmatmul.bf16.gmra.mxu1 %v3262_v42 }
 0x165   : > { %v1318_v33 = vpop.f32.mrf.mxu0 }
 0x166   : > { %v1319_v34 = vadd.f32 %v1318_v33, %v3271_v24  ;;  %v1367_v35 = vpop.f32.mrf.mxu1 }
 0x168   : > { %v1368_v36 = vadd.f32 %v1367_v35, %v1319_v34  ;;  %1415 = vmatmul.bf16.vlgmr.msra.gmra.mxu2 %v3173_v63  ;;  %1513 = vmatmul.bf16.vlgmr.msra.gmra.mxu0 %v3173_v63  ;;  %v2575_v34 = vld [vmem:[#allocation8 + $0xd4] sm:$0xf]  ;;  %v2251_v35 = vld [vmem:[#allocation8 + $0xe8] sm:$0xf0] }
 0x169   : > { %1464 = vmatmul.bf16.vlgmr.msra.gmra.mxu3 %v3175_v0  ;;  %1562 = vmatmul.bf16.vlgmr.msra.gmra.mxu1 %v3175_v0  ;;  %v2254_v38 = vor.u32 %v2575_v34, %v2251_v35  ;;  %v2393_v35 = vld [vmem:[#allocation8 + $0x1f0] sm:$0xf] }
 0x16a   : > { %1800 = vst [vmem:[%s3282_s29 + $0x8] sm:$0xff] %v1368_v36 }
 0x16b   : > { %v1220_v40 = vpop.f32.mrf.mxu2  ;;  %1704 = vmatpush.bf16.msrb.mxu0 %v2254_v38 }
 0x16c   : > { %v1221_v46 = vadd.f32 %v1220_v40, %v3278_v37  ;;  %v1269_v49 = vpop.f32.mrf.mxu3  ;;  %v2443_v40 = vld [vmem:[#allocation8 + $0x268] sm:$0xf0] }
 0x16d   : > { %v1320_v51 = vpop.f32.mrf.mxu0  ;;  %v2446_v45 = vor.u32 %v2623_v39, %v2443_v40 }
 0x16e   : > { %v1270_v55 = vadd.f32 %v1269_v49, %v1221_v46  ;;  %v1321_v57 = vadd.f32 %v1320_v51, %v3271_v24  ;;  %v1369_v58 = vpop.f32.mrf.mxu1 }
 0x16f   : > { %1753 = vmatpush.bf16.msrb.mxu1 %v2446_v45 }
 0x170   : > { %1799 = vst [vmem:[%s3282_s29] sm:$0xff] %v1270_v55  ;;  %v1370_v59 = vadd.f32 %v1369_v58, %v1321_v57  ;;  %v2225_v57 = vld [vmem:[#allocation8 + $0xa0] sm:$0xf]  ;;  %v2572_v58 = vld [vmem:[#allocation8 + $0xb4] sm:$0xf0] }
 0x171   : > { %v2226_v60 = vor.u32 %v2572_v58, %v2225_v57  ;;  %v2611_v58 = vld [vmem:[#allocation8 + $0x1f4] sm:$0xf] }
 0x172   : > { %1806 = vst [vmem:[%s3282_s29 + $0x38] sm:$0xff] %v1370_v59 }
 0x173   : > { %v1222_v62 = vpop.f32.mrf.mxu2  ;;  %1607 = vmatpush.bf16.msrb.mxu2 %v2226_v60 }
 0x174   : > { %v1223_v4 = vadd.f32 %v1222_v62, %v3278_v37  ;;  %v1271_v5 = vpop.f32.mrf.mxu3  ;;  %v2620_v62 = vld [vmem:[#allocation8 + $0x234] sm:$0xf0] }
 0x175   : > { %v1323_v7 = vpop.f32.mrf.mxu0  ;;  %v2418_v3 = vor.u32 %v2620_v62, %v2417_v61 }
 0x176   : > { %v1272_v8 = vadd.f32 %v1271_v5, %v1223_v4  ;;  %v1324_v9 = vadd.f32 %v1323_v7, %v3271_v24  ;;  %v1372_v10 = vpop.f32.mrf.mxu1 }
 0x177   : > { %1656 = vmatpush.bf16.msrb.mxu3 %v2418_v3 }
 0x178   : > { %1805 = vst [vmem:[%s3282_s29 + $0x30] sm:$0xff] %v1272_v8  ;;  %v1373_v11 = vadd.f32 %v1372_v10, %v1324_v9  ;;  %1420 = vmatmul.bf16.gmra.mxu2 %v3185_v25  ;;  %1518 = vmatmul.bf16.gmra.mxu0 %v3185_v25  ;;  %v2569_v9 = vld [vmem:[#allocation8 + $0xa4] sm:$0xf]  ;;  %v2227_v10 = vld [vmem:[#allocation8 + $0xb8] sm:$0xf0] }
 0x179   : > { %1469 = vmatmul.bf16.gmra.mxu3 %v3187_v26  ;;  %1567 = vmatmul.bf16.gmra.mxu1 %v3187_v26  ;;  %v2230_v12 = vor.u32 %v2569_v9, %v2227_v10  ;;  %v2369_v10 = vld [vmem:[#allocation8 + $0x1c0] sm:$0xf] }
 0x17a   : > { %1812 = vst [vmem:[%s3282_s29 + $0x68] sm:$0xff] %v1373_v11 }
 0x17b   : > { %v1225_v14 = vpop.f32.mrf.mxu2  ;;  %1705 = vmatpush.bf16.msrb.mxu0 %v2230_v12 }
 0x17c   : > { %v1226_v20 = vadd.f32 %v1225_v14, %v3278_v37  ;;  %v1274_v27 = vpop.f32.mrf.mxu3  ;;  %v2419_v14 = vld [vmem:[#allocation8 + $0x238] sm:$0xf0] }
 0x17d   : > { %v1325_v29 = vpop.f32.mrf.mxu0  ;;  %v2422_v19 = vor.u32 %v2617_v43, %v2419_v14 }
 0x17e   : > { %v1275_v30 = vadd.f32 %v1274_v27, %v1226_v20  ;;  %v1326_v31 = vadd.f32 %v1325_v29, %v3271_v24  ;;  %v1374_v32 = vpop.f32.mrf.mxu1 }
 0x17f   : > { %1754 = vmatpush.bf16.msrb.mxu1 %v2422_v19 }
 0x180   : > { %1811 = vst [vmem:[%s3282_s29 + $0x60] sm:$0xff] %v1275_v30  ;;  %v1375_v33 = vadd.f32 %v1374_v32, %v1326_v31  ;;  %v2201_v31 = vld [vmem:[#allocation8 + $0x70] sm:$0xf]  ;;  %v2566_v32 = vld [vmem:[#allocation8 + $0x84] sm:$0xf0] }
 0x181   : > { %v2202_v34 = vor.u32 %v2566_v32, %v2201_v31  ;;  %v2605_v32 = vld [vmem:[#allocation8 + $0x1c4] sm:$0xf] }
 0x182   : > { %1818 = vst [vmem:[%s3282_s29 + $0x98] sm:$0xff] %v1375_v33 }
 0x183   : > { %v1227_v36 = vpop.f32.mrf.mxu2  ;;  %1608 = vmatpush.bf16.msrb.mxu2 %v2202_v34 }
 0x184   : > { %v1228_v41 = vadd.f32 %v1227_v36, %v3278_v37  ;;  %v1276_v44 = vpop.f32.mrf.mxu3  ;;  %v2614_v36 = vld [vmem:[#allocation8 + $0x204] sm:$0xf0] }
 0x185   : > { %v1328_v46 = vpop.f32.mrf.mxu0  ;;  %v2394_v40 = vor.u32 %v2614_v36, %v2393_v35 }
 0x186   : > { %v1277_v49 = vadd.f32 %v1276_v44, %v1228_v41  ;;  %v1329_v50 = vadd.f32 %v1328_v46, %v3271_v24  ;;  %v1377_v51 = vpop.f32.mrf.mxu1 }
 0x187   : > { %1657 = vmatpush.bf16.msrb.mxu3 %v2394_v40 }
 0x188   : > { %1817 = vst [vmem:[%s3282_s29 + $0x90] sm:$0xff] %v1277_v49  ;;  %v1378_v55 = vadd.f32 %v1377_v51, %v1329_v50  ;;  %1425 = vmatmul.bf16.gmra.mxu2 %v3199_v54  ;;  %1523 = vmatmul.bf16.gmra.mxu0 %v3199_v54  ;;  %v2563_v50 = vld [vmem:[#allocation8 + $0x74] sm:$0xf]  ;;  %v2203_v51 = vld [vmem:[#allocation8 + $0x88] sm:$0xf0] }
 0x189   : > { %1474 = vmatmul.bf16.gmra.mxu3 %v3201_v56  ;;  %1572 = vmatmul.bf16.gmra.mxu1 %v3201_v56  ;;  %v2206_v57 = vor.u32 %v2563_v50, %v2203_v51  ;;  %v2345_v51 = vld [vmem:[#allocation8 + $0x190] sm:$0xf] }
 0x18a   : > { %1824 = vst [vmem:[%s3282_s29 + $0xc8] sm:$0xff] %v1378_v55 }
 0x18b   : > { %v1230_v59 = vpop.f32.mrf.mxu2  ;;  %1706 = vmatpush.bf16.msrb.mxu0 %v2206_v57 }
 0x18c   : > { %v1231_v1 = vadd.f32 %v1230_v59, %v3278_v37  ;;  %v1279_v2 = vpop.f32.mrf.mxu3  ;;  %v2395_v59 = vld [vmem:[#allocation8 + $0x208] sm:$0xf0] }
 0x18d   : > { %v1330_v4 = vpop.f32.mrf.mxu0  ;;  %v2398_v62 = vor.u32 %v2611_v58, %v2395_v59 }
 0x18e   : > { %v1280_v5 = vadd.f32 %v1279_v2, %v1231_v1  ;;  %v1331_v6 = vadd.f32 %v1330_v4, %v3271_v24  ;;  %v1379_v7 = vpop.f32.mrf.mxu1 }
 0x18f   : > { %1755 = vmatpush.bf16.msrb.mxu1 %v2398_v62 }
 0x190   : > { %1823 = vst [vmem:[%s3282_s29 + $0xc0] sm:$0xff] %v1280_v5  ;;  %v1380_v8 = vadd.f32 %v1379_v7, %v1331_v6  ;;  %v2177_v6 = vld [vmem:[#allocation8 + $0x40] sm:$0xf]  ;;  %v2560_v7 = vld [vmem:[#allocation8 + $0x54] sm:$0xf0] }
 0x191   : > { %v2178_v9 = vor.u32 %v2560_v7, %v2177_v6  ;;  %v2599_v7 = vld [vmem:[#allocation8 + $0x194] sm:$0xf] }
 0x192   : > { %1830 = vst [vmem:[%s3282_s29 + $0xf8] sm:$0xff] %v1380_v8 }
 0x193   : > { %v1232_v11 = vpop.f32.mrf.mxu2  ;;  %1609 = vmatpush.bf16.msrb.mxu2 %v2178_v9 }
 0x194   : > { %v1233_v16 = vadd.f32 %v1232_v11, %v3278_v37  ;;  %v1281_v18 = vpop.f32.mrf.mxu3  ;;  %v2608_v11 = vld [vmem:[#allocation8 + $0x1d4] sm:$0xf0] }
 0x195   : > { %v1333_v20 = vpop.f32.mrf.mxu0  ;;  %v2370_v14 = vor.u32 %v2608_v11, %v2369_v10 }
 0x196   : > { %v1282_v27 = vadd.f32 %v1281_v18, %v1233_v16  ;;  %v1334_v28 = vadd.f32 %v1333_v20, %v3271_v24  ;;  %v1382_v29 = vpop.f32.mrf.mxu1 }
 0x197   : > { %1658 = vmatpush.bf16.msrb.mxu3 %v2370_v14 }
 0x198   : > { %1829 = vst [vmem:[%s3282_s29 + $0xf0] sm:$0xff] %v1282_v27  ;;  %v1383_v30 = vadd.f32 %v1382_v29, %v1334_v28  ;;  %1430 = vmatmul.bf16.gmra.mxu2 %v3211_v21  ;;  %1528 = vmatmul.bf16.gmra.mxu0 %v3211_v21  ;;  %v2557_v28 = vld [vmem:[#allocation8 + $0x44] sm:$0xf]  ;;  %v2179_v29 = vld [vmem:[#allocation8 + $0x58] sm:$0xf0] }
 0x199   : > { %1479 = vmatmul.bf16.gmra.mxu3 %v3213_v22  ;;  %1577 = vmatmul.bf16.gmra.mxu1 %v3213_v22  ;;  %v2182_v31 = vor.u32 %v2557_v28, %v2179_v29 }
 0x19a   : > { %1836 = vst [vmem:[%s3282_s29 + $0x128] sm:$0xff] %v1383_v30 }
 0x19b   : > { %v1235_v33 = vpop.f32.mrf.mxu2  ;;  %1707 = vmatpush.bf16.msrb.mxu0 %v2182_v31 }
 0x19c   : > { %v1236_v38 = vadd.f32 %v1235_v33, %v3278_v37  ;;  %v1284_v39 = vpop.f32.mrf.mxu3  ;;  %v2371_v33 = vld [vmem:[#allocation8 + $0x1d8] sm:$0xf0] }
 0x19d   : > { %v1335_v41 = vpop.f32.mrf.mxu0  ;;  %v2374_v36 = vor.u32 %v2605_v32, %v2371_v33 }
 0x19e   : > { %v1285_v44 = vadd.f32 %v1284_v39, %v1236_v38  ;;  %v1336_v45 = vadd.f32 %v1335_v41, %v3271_v24  ;;  %v1384_v46 = vpop.f32.mrf.mxu1 }
 0x19f   : > { %1756 = vmatpush.bf16.msrb.mxu1 %v2374_v36 }
 0x1a0   : > { %1835 = vst [vmem:[%s3282_s29 + $0x120] sm:$0xff] %v1285_v44  ;;  %v1385_v49 = vadd.f32 %v1384_v46, %v1336_v45  ;;  %v2153_v45 = vld [vmem:[#allocation8 + $0x10] sm:$0xf]  ;;  %v2554_v46 = vld [vmem:[#allocation8 + $0x24] sm:$0xf0] }
 0x1a1   : > { %v2154_v50 = vor.u32 %v2554_v46, %v2153_v45 }
 0x1a2   : > { %1842 = vst [vmem:[%s3282_s29 + $0x158] sm:$0xff] %v1385_v49 }
 0x1a3   : > { %v1237_v55 = vpop.f32.mrf.mxu2  ;;  %1610 = vmatpush.bf16.msrb.mxu2 %v2154_v50 }
 0x1a4   : > { %v1238_v60 = vadd.f32 %v1237_v55, %v3278_v37  ;;  %v1286_v61 = vpop.f32.mrf.mxu3  ;;  %v2602_v55 = vld [vmem:[#allocation8 + $0x1a4] sm:$0xf0] }
 0x1a5   : > { %v1338_v1 = vpop.f32.mrf.mxu0  ;;  %v2346_v59 = vor.u32 %v2602_v55, %v2345_v51 }
 0x1a6   : > { %v1287_v2 = vadd.f32 %v1286_v61, %v1238_v60  ;;  %v1339_v3 = vadd.f32 %v1338_v1, %v3271_v24  ;;  %v1387_v4 = vpop.f32.mrf.mxu1 }
 0x1a7   : > { %1659 = vmatpush.bf16.msrb.mxu3 %v2346_v59 }
 0x1a8   : > { %1841 = vst [vmem:[%s3282_s29 + $0x150] sm:$0xff] %v1287_v2  ;;  %v1388_v5 = vadd.f32 %v1387_v4, %v1339_v3  ;;  %1435 = vmatmul.bf16.gmra.mxu2 %v3224_v52  ;;  %1533 = vmatmul.bf16.gmra.mxu0 %v3224_v52  ;;  %v2551_v3 = vld [vmem:[#allocation8 + $0x14] sm:$0xf]  ;;  %v2155_v4 = vld [vmem:[#allocation8 + $0x28] sm:$0xf0] }
 0x1a9   : > { %1484 = vmatmul.bf16.gmra.mxu3 %v3226_v53  ;;  %1582 = vmatmul.bf16.gmra.mxu1 %v3226_v53  ;;  %v2158_v6 = vor.u32 %v2551_v3, %v2155_v4  ;;  %v3382_v4 = vperm.slane %v3268_v23, 2 }
 0x1aa   : > { %1848 = vst [vmem:[%s3282_s29 + $0x188] sm:$0xff] %v1388_v5 }
 0x1ab   : > { %v1240_v8 = vpop.f32.mrf.mxu2  ;;  %1708 = vmatpush.bf16.msrb.mxu0 %v2158_v6 }
 0x1ac   : > { %v1241_v12 = vadd.f32 %v1240_v8, %v3278_v37  ;;  %v1289_v43 = vpop.f32.mrf.mxu3  ;;  %v2347_v8 = vld [vmem:[#allocation8 + $0x1a8] sm:$0xf0] }
 0x1ad   : > { %v1340_v16 = vpop.f32.mrf.mxu0  ;;  %v2350_v11 = vor.u32 %v2599_v7, %v2347_v8 }
 0x1ae   : > { %v1290_v18 = vadd.f32 %v1289_v43, %v1241_v12  ;;  %v1341_v19 = vadd.f32 %v1340_v16, %v3271_v24  ;;  %v1389_v20 = vpop.f32.mrf.mxu1 }
 0x1af   : > { %1757 = vmatpush.bf16.msrb.mxu1 %v2350_v11 }
 0x1b0   : > { %1847 = vst [vmem:[%s3282_s29 + $0x180] sm:$0xff] %v1290_v18  ;;  %v1390_v27 = vadd.f32 %v1389_v20, %v1341_v19 }
 0x1b2   : > { %1854 = vst [vmem:[%s3282_s29 + $0x1b8] sm:$0xff] %v1390_v27 }
 0x1b3   : > { %v1242_v30 = vpop.f32.mrf.mxu2 }
 0x1b4   : > { %v1243_v34 = vadd.f32 %v1242_v30, %v3278_v37  ;;  %v1291_v35 = vpop.f32.mrf.mxu3 }
 0x1b5   : > { %v1343_v38 = vpop.f32.mrf.mxu0 }
 0x1b6   : > { %v1292_v39 = vadd.f32 %v1291_v35, %v1243_v34  ;;  %v1344_v40 = vadd.f32 %v1343_v38, %v3271_v24  ;;  %v1392_v41 = vpop.f32.mrf.mxu1 }
 0x1b8   : > { %1853 = vst [vmem:[%s3282_s29 + $0x1b0] sm:$0xff] %v1292_v39  ;;  %v1393_v44 = vadd.f32 %v1392_v41, %v1344_v40  ;;  %1440 = vmatmul.bf16.gmra.mxu2 %v3236_v15  ;;  %1538 = vmatmul.bf16.gmra.mxu0 %v3236_v15 }
 0x1b9   : > { %1489 = vmatmul.bf16.gmra.mxu3 %v3238_v17  ;;  %1587 = vmatmul.bf16.gmra.mxu1 %v3238_v17 }
 0x1ba   : > { %1860 = vst [vmem:[%s3282_s29 + $0x1e8] sm:$0xff] %v1393_v44 }
 0x1bb   : > { %v1245_v49 = vpop.f32.mrf.mxu2 }
 0x1bc   : > { %v1246_v57 = vadd.f32 %v1245_v49, %v3278_v37  ;;  %v1294_v58 = vpop.f32.mrf.mxu3 }
 0x1bd   : > { %v1345_v60 = vpop.f32.mrf.mxu0 }
 0x1be   : > { %v1295_v61 = vadd.f32 %v1294_v58, %v1246_v57  ;;  %v1346_v62 = vadd.f32 %v1345_v60, %v3271_v24  ;;  %v1394_v1 = vpop.f32.mrf.mxu1  ;;  %v3374_v58 = vperm.slane %v3268_v23, 3 }
 0x1c0   : > { %1859 = vst [vmem:[%s3282_s29 + $0x1e0] sm:$0xff] %v1295_v61  ;;  %v1395_v2 = vadd.f32 %v1394_v1, %v1346_v62 }
 0x1c2   : > { %1866 = vst [vmem:[%s3282_s29 + $0x218] sm:$0xff] %v1395_v2 }
 0x1c3   : > { %v1247_v5 = vpop.f32.mrf.mxu2 }
 0x1c4   : > { %v1248_v9 = vadd.f32 %v1247_v5, %v3278_v37  ;;  %v1296_v10 = vpop.f32.mrf.mxu3 }
 0x1c5   : > { %v1348_v12 = vpop.f32.mrf.mxu0 }
 0x1c6   : > { %v1297_v43 = vadd.f32 %v1296_v10, %v1248_v9  ;;  %v1349_v14 = vadd.f32 %v1348_v12, %v3271_v24  ;;  %v1397_v16 = vpop.f32.mrf.mxu1 }
 0x1c8   : > { %1865 = vst [vmem:[%s3282_s29 + $0x210] sm:$0xff] %v1297_v43  ;;  %v1398_v18 = vadd.f32 %v1397_v16, %v1349_v14  ;;  %1445 = vmatmul.bf16.gmra.mxu2 %v3248_v47  ;;  %1543 = vmatmul.bf16.gmra.mxu0 %v3248_v47 }
 0x1c9   : > { %1494 = vmatmul.bf16.gmra.mxu3 %v3250_v48  ;;  %1592 = vmatmul.bf16.gmra.mxu1 %v3250_v48 }
 0x1ca   : > { %1872 = vst [vmem:[%s3282_s29 + $0x248] sm:$0xff] %v1398_v18 }
 0x1cb   : > { %v1250_v19 = vpop.f32.mrf.mxu2 }
 0x1cc   : > { %v1251_v20 = vadd.f32 %v1250_v19, %v3278_v37  ;;  %v1299_v27 = vpop.f32.mrf.mxu3 }
 0x1cd   : > { %v1350_v28 = vpop.f32.mrf.mxu0 }
 0x1ce   : > { %v1300_v29 = vadd.f32 %v1299_v27, %v1251_v20  ;;  %v1351_v30 = vadd.f32 %v1350_v28, %v3271_v24  ;;  %v1399_v31 = vpop.f32.mrf.mxu1 }
 0x1d0   : > { %1871 = vst [vmem:[%s3282_s29 + $0x240] sm:$0xff] %v1300_v29  ;;  %v1400_v32 = vadd.f32 %v1399_v31, %v1351_v30 }
 0x1d2   : > { %1878 = vst [vmem:[%s3282_s29 + $0x278] sm:$0xff] %v1400_v32 }
 0x1d3   : > { %v1252_v33 = vpop.f32.mrf.mxu2 }
 0x1d4   : > { %v1253_v34 = vadd.f32 %v1252_v33, %v3278_v37  ;;  %v1301_v35 = vpop.f32.mrf.mxu3 }
 0x1d5   : > { %v1353_v36 = vpop.f32.mrf.mxu0 }
 0x1d6   : > { %v1302_v38 = vadd.f32 %v1301_v35, %v1253_v34  ;;  %v1354_v39 = vadd.f32 %v1353_v36, %v3271_v24  ;;  %v1402_v40 = vpop.f32.mrf.mxu1 }
 0x1d8   : > { %1877 = vst [vmem:[%s3282_s29 + $0x270] sm:$0xff] %v1302_v38  ;;  %v1403_v41 = vadd.f32 %v1402_v40, %v1354_v39  ;;  %1450 = vmatmul.bf16.gmra.mxu2 %v3260_v13  ;;  %1548 = vmatmul.bf16.gmra.mxu0 %v3260_v13 }
 0x1d9   : > { %1499 = vmatmul.bf16.gmra.mxu3 %v3262_v42  ;;  %1597 = vmatmul.bf16.gmra.mxu1 %v3262_v42 }
 0x1da   : > { %1884 = vst [vmem:[%s3282_s29 + $0x2a8] sm:$0xff] %v1403_v41 }
 0x1db   : > { %v1255_v44 = vpop.f32.mrf.mxu2 }
 0x1dc   : > { %v1256_v45 = vadd.f32 %v1255_v44, %v3278_v37  ;;  %v1304_v46 = vpop.f32.mrf.mxu3 }
 0x1dd   : > { %v1355_v49 = vpop.f32.mrf.mxu0 }
 0x1de   : > { %v1305_v50 = vadd.f32 %v1304_v46, %v1256_v45  ;;  %v1356_v51 = vadd.f32 %v1355_v49, %v3271_v24  ;;  %v1404_v55 = vpop.f32.mrf.mxu1 }
 0x1e0   : > { %1883 = vst [vmem:[%s3282_s29 + $0x2a0] sm:$0xff] %v1305_v50  ;;  %v1405_v57 = vadd.f32 %v1404_v55, %v1356_v51 }
 0x1e2   : > { %1890 = vst [vmem:[%s3282_s29 + $0x2d8] sm:$0xff] %v1405_v57 }
 0x1e3   : > { %v1257_v59 = vpop.f32.mrf.mxu2 }
 0x1e4   : > { %v1258_v60 = vadd.f32 %v1257_v59, %v3278_v37  ;;  %v1306_v61 = vpop.f32.mrf.mxu3 }
 0x1e5   : > { %v1514_v62 = vpop.f32.mrf.mxu0 }
 0x1e6   : > { %v1307_v1 = vadd.f32 %v1306_v61, %v1258_v60  ;;  %v1515_v2 = vadd.f32 %v1514_v62, %v3374_v58  ;;  %v1563_v3 = vpop.f32.mrf.mxu1 }
 0x1e8   : > { %1889 = vst [vmem:[%s3282_s29 + $0x2d0] sm:$0xff] %v1307_v1  ;;  %v1564_v24 = vadd.f32 %v1563_v3, %v1515_v2  ;;  %1611 = vmatmul.bf16.vlgmr.msrb.gmra.mxu2 %v3173_v63  ;;  %1709 = vmatmul.bf16.vlgmr.msrb.gmra.mxu0 %v3173_v63 }
 0x1e9   : > { %1660 = vmatmul.bf16.vlgmr.msrb.gmra.mxu3 %v3175_v0  ;;  %1758 = vmatmul.bf16.vlgmr.msrb.gmra.mxu1 %v3175_v0 }
 0x1ea   : > { %1802 = vst [vmem:[%s3282_s29 + $0x18] sm:$0xff] %v1564_v24 }
 0x1eb   : > { %v1416_v37 = vpop.f32.mrf.mxu2 }
 0x1ec   : > { %v1417_v5 = vadd.f32 %v1416_v37, %v3382_v4  ;;  %v1465_v6 = vpop.f32.mrf.mxu3 }
 0x1ed   : > { %v1516_v7 = vpop.f32.mrf.mxu0 }
 0x1ee   : > { %v1466_v8 = vadd.f32 %v1465_v6, %v1417_v5  ;;  %v1517_v9 = vadd.f32 %v1516_v7, %v3374_v58  ;;  %v1565_v10 = vpop.f32.mrf.mxu1 }
 0x1f0   : > { %1801 = vst [vmem:[%s3282_s29 + $0x10] sm:$0xff] %v1466_v8  ;;  %v1566_v63 = vadd.f32 %v1565_v10, %v1517_v9 }
 0x1f2   : > { %1808 = vst [vmem:[%s3282_s29 + $0x48] sm:$0xff] %v1566_v63 }
 0x1f3   : > { %v1418_v11 = vpop.f32.mrf.mxu2 }
 0x1f4   : > { %v1419_v12 = vadd.f32 %v1418_v11, %v3382_v4  ;;  %v1467_v43 = vpop.f32.mrf.mxu3 }
 0x1f5   : > { %v1519_v0 = vpop.f32.mrf.mxu0 }
 0x1f6   : > { %v1468_v14 = vadd.f32 %v1467_v43, %v1419_v12  ;;  %v1520_v16 = vadd.f32 %v1519_v0, %v3374_v58  ;;  %v1568_v18 = vpop.f32.mrf.mxu1 }
 0x1f8   : > { %1807 = vst [vmem:[%s3282_s29 + $0x40] sm:$0xff] %v1468_v14  ;;  %v1569_v19 = vadd.f32 %v1568_v18, %v1520_v16  ;;  %1616 = vmatmul.bf16.gmra.mxu2 %v3185_v25  ;;  %1714 = vmatmul.bf16.gmra.mxu0 %v3185_v25 }
 0x1f9   : > { %1665 = vmatmul.bf16.gmra.mxu3 %v3187_v26  ;;  %1763 = vmatmul.bf16.gmra.mxu1 %v3187_v26 }
 0x1fa   : > { %1814 = vst [vmem:[%s3282_s29 + $0x78] sm:$0xff] %v1569_v19 }
 0x1fb   : > { %v1421_v20 = vpop.f32.mrf.mxu2 }
 0x1fc   : > { %v1422_v27 = vadd.f32 %v1421_v20, %v3382_v4  ;;  %v1470_v28 = vpop.f32.mrf.mxu3 }
 0x1fd   : > { %v1521_v29 = vpop.f32.mrf.mxu0 }
 0x1fe   : > { %v1471_v30 = vadd.f32 %v1470_v28, %v1422_v27  ;;  %v1522_v31 = vadd.f32 %v1521_v29, %v3374_v58  ;;  %v1570_v32 = vpop.f32.mrf.mxu1 }
 0x200   : > { %1813 = vst [vmem:[%s3282_s29 + $0x70] sm:$0xff] %v1471_v30  ;;  %v1571_v33 = vadd.f32 %v1570_v32, %v1522_v31 }
 0x202   : > { %1820 = vst [vmem:[%s3282_s29 + $0xa8] sm:$0xff] %v1571_v33 }
 0x203   : > { %v1423_v25 = vpop.f32.mrf.mxu2 }
 0x204   : > { %v1424_v34 = vadd.f32 %v1423_v25, %v3382_v4  ;;  %v1472_v35 = vpop.f32.mrf.mxu3 }
 0x205   : > { %v1524_v26 = vpop.f32.mrf.mxu0 }
 0x206   : > { %v1473_v36 = vadd.f32 %v1472_v35, %v1424_v34  ;;  %v1525_v38 = vadd.f32 %v1524_v26, %v3374_v58  ;;  %v1573_v39 = vpop.f32.mrf.mxu1 }
 0x208   : > { %1819 = vst [vmem:[%s3282_s29 + $0xa0] sm:$0xff] %v1473_v36  ;;  %v1574_v40 = vadd.f32 %v1573_v39, %v1525_v38  ;;  %1621 = vmatmul.bf16.gmra.mxu2 %v3199_v54  ;;  %1719 = vmatmul.bf16.gmra.mxu0 %v3199_v54 }
 0x209   : > { %1670 = vmatmul.bf16.gmra.mxu3 %v3201_v56  ;;  %1768 = vmatmul.bf16.gmra.mxu1 %v3201_v56 }
 0x20a   : > { %1826 = vst [vmem:[%s3282_s29 + $0xd8] sm:$0xff] %v1574_v40 }
 0x20b   : > { %v1426_v41 = vpop.f32.mrf.mxu2 }
 0x20c   : > { %v1427_v44 = vadd.f32 %v1426_v41, %v3382_v4  ;;  %v1475_v45 = vpop.f32.mrf.mxu3 }
 0x20d   : > { %v1526_v46 = vpop.f32.mrf.mxu0 }
 0x20e   : > { %v1476_v49 = vadd.f32 %v1475_v45, %v1427_v44  ;;  %v1527_v50 = vadd.f32 %v1526_v46, %v3374_v58  ;;  %v1575_v51 = vpop.f32.mrf.mxu1 }
 0x210   : > { %1825 = vst [vmem:[%s3282_s29 + $0xd0] sm:$0xff] %v1476_v49  ;;  %v1576_v55 = vadd.f32 %v1575_v51, %v1527_v50 }
 0x212   : > { %1832 = vst [vmem:[%s3282_s29 + $0x108] sm:$0xff] %v1576_v55 }
 0x213   : > { %v1428_v54 = vpop.f32.mrf.mxu2 }
 0x214   : > { %v1429_v57 = vadd.f32 %v1428_v54, %v3382_v4  ;;  %v1477_v59 = vpop.f32.mrf.mxu3 }
 0x215   : > { %v1529_v56 = vpop.f32.mrf.mxu0 }
 0x216   : > { %v1478_v60 = vadd.f32 %v1477_v59, %v1429_v57  ;;  %v1530_v61 = vadd.f32 %v1529_v56, %v3374_v58  ;;  %v1578_v62 = vpop.f32.mrf.mxu1 }
 0x218   : > { %1831 = vst [vmem:[%s3282_s29 + $0x100] sm:$0xff] %v1478_v60  ;;  %v1579_v1 = vadd.f32 %v1578_v62, %v1530_v61  ;;  %1626 = vmatmul.bf16.gmra.mxu2 %v3211_v21  ;;  %1724 = vmatmul.bf16.gmra.mxu0 %v3211_v21 }
 0x219   : > { %1675 = vmatmul.bf16.gmra.mxu3 %v3213_v22  ;;  %1773 = vmatmul.bf16.gmra.mxu1 %v3213_v22 }
 0x21a   : > { %1838 = vst [vmem:[%s3282_s29 + $0x138] sm:$0xff] %v1579_v1 }
 0x21b   : > { %v1431_v2 = vpop.f32.mrf.mxu2 }
 0x21c   : > { %v1432_v3 = vadd.f32 %v1431_v2, %v3382_v4  ;;  %v1480_v24 = vpop.f32.mrf.mxu3 }
 0x21d   : > { %v1531_v37 = vpop.f32.mrf.mxu0 }
 0x21e   : > { %v1481_v5 = vadd.f32 %v1480_v24, %v1432_v3  ;;  %v1532_v6 = vadd.f32 %v1531_v37, %v3374_v58  ;;  %v1580_v7 = vpop.f32.mrf.mxu1 }
 0x220   : > { %1837 = vst [vmem:[%s3282_s29 + $0x130] sm:$0xff] %v1481_v5  ;;  %v1581_v8 = vadd.f32 %v1580_v7, %v1532_v6 }
 0x222   : > { %1844 = vst [vmem:[%s3282_s29 + $0x168] sm:$0xff] %v1581_v8 }
 0x223   : > { %v1433_v21 = vpop.f32.mrf.mxu2 }
 0x224   : > { %v1434_v9 = vadd.f32 %v1433_v21, %v3382_v4  ;;  %v1482_v10 = vpop.f32.mrf.mxu3 }
 0x225   : > { %v1534_v22 = vpop.f32.mrf.mxu0 }
 0x226   : > { %v1483_v63 = vadd.f32 %v1482_v10, %v1434_v9  ;;  %v1535_v11 = vadd.f32 %v1534_v22, %v3374_v58  ;;  %v1583_v12 = vpop.f32.mrf.mxu1 }
 0x228   : > { %1843 = vst [vmem:[%s3282_s29 + $0x160] sm:$0xff] %v1483_v63  ;;  %v1584_v43 = vadd.f32 %v1583_v12, %v1535_v11  ;;  %1631 = vmatmul.bf16.gmra.mxu2 %v3224_v52  ;;  %1729 = vmatmul.bf16.gmra.mxu0 %v3224_v52 }
 0x229   : > { %1680 = vmatmul.bf16.gmra.mxu3 %v3226_v53  ;;  %1778 = vmatmul.bf16.gmra.mxu1 %v3226_v53 }
 0x22a   : > { %1850 = vst [vmem:[%s3282_s29 + $0x198] sm:$0xff] %v1584_v43 }
 0x22b   : > { %v1436_v0 = vpop.f32.mrf.mxu2 }
 0x22c   : > { %v1437_v14 = vadd.f32 %v1436_v0, %v3382_v4  ;;  %v1485_v16 = vpop.f32.mrf.mxu3 }
 0x22d   : > { %v1536_v18 = vpop.f32.mrf.mxu0 }
 0x22e   : > { %v1486_v19 = vadd.f32 %v1485_v16, %v1437_v14  ;;  %v1537_v20 = vadd.f32 %v1536_v18, %v3374_v58  ;;  %v1585_v27 = vpop.f32.mrf.mxu1  ;;  %v3482_v18 = vperm.slane %v3268_v23, 4 }
 0x230   : > { %1849 = vst [vmem:[%s3282_s29 + $0x190] sm:$0xff] %v1486_v19  ;;  %v1586_v28 = vadd.f32 %v1585_v27, %v1537_v20 }
 0x232   : > { %1856 = vst [vmem:[%s3282_s29 + $0x1c8] sm:$0xff] %v1586_v28 }
 0x233   : > { %v1438_v52 = vpop.f32.mrf.mxu2 }
 0x234   : > { %v1439_v29 = vadd.f32 %v1438_v52, %v3382_v4  ;;  %v1487_v30 = vpop.f32.mrf.mxu3 }
 0x235   : > { %v1539_v53 = vpop.f32.mrf.mxu0 }
 0x236   : > { %v1488_v31 = vadd.f32 %v1487_v30, %v1439_v29  ;;  %v1540_v32 = vadd.f32 %v1539_v53, %v3374_v58  ;;  %v1588_v33 = vpop.f32.mrf.mxu1 }
 0x238   : > { %1855 = vst [vmem:[%s3282_s29 + $0x1c0] sm:$0xff] %v1488_v31  ;;  %v1589_v25 = vadd.f32 %v1588_v33, %v1540_v32  ;;  %1636 = vmatmul.bf16.gmra.mxu2 %v3236_v15  ;;  %1734 = vmatmul.bf16.gmra.mxu0 %v3236_v15 }
 0x239   : > { %1685 = vmatmul.bf16.gmra.mxu3 %v3238_v17  ;;  %1783 = vmatmul.bf16.gmra.mxu1 %v3238_v17 }
 0x23a   : > { %1862 = vst [vmem:[%s3282_s29 + $0x1f8] sm:$0xff] %v1589_v25 }
 0x23b   : > { %v1441_v34 = vpop.f32.mrf.mxu2 }
 0x23c   : > { %v1442_v35 = vadd.f32 %v1441_v34, %v3382_v4  ;;  %v1490_v26 = vpop.f32.mrf.mxu3 }
 0x23d   : > { %v1541_v36 = vpop.f32.mrf.mxu0 }
 0x23e   : > { %v1491_v38 = vadd.f32 %v1490_v26, %v1442_v35  ;;  %v1542_v39 = vadd.f32 %v1541_v36, %v3374_v58  ;;  %v1590_v40 = vpop.f32.mrf.mxu1 }
 0x240   : > { %1861 = vst [vmem:[%s3282_s29 + $0x1f0] sm:$0xff] %v1491_v38  ;;  %v1591_v41 = vadd.f32 %v1590_v40, %v1542_v39 }
 0x242   : > { %1868 = vst [vmem:[%s3282_s29 + $0x228] sm:$0xff] %v1591_v41 }
 0x243   : > { %v1443_v15 = vpop.f32.mrf.mxu2 }
 0x244   : > { %v1444_v44 = vadd.f32 %v1443_v15, %v3382_v4  ;;  %v1492_v45 = vpop.f32.mrf.mxu3 }
 0x245   : > { %v1544_v17 = vpop.f32.mrf.mxu0 }
 0x246   : > { %v1493_v46 = vadd.f32 %v1492_v45, %v1444_v44  ;;  %v1545_v49 = vadd.f32 %v1544_v17, %v3374_v58  ;;  %v1593_v50 = vpop.f32.mrf.mxu1 }
 0x248   : > { %1867 = vst [vmem:[%s3282_s29 + $0x220] sm:$0xff] %v1493_v46  ;;  %v1594_v51 = vadd.f32 %v1593_v50, %v1545_v49  ;;  %1641 = vmatmul.bf16.gmra.mxu2 %v3248_v47  ;;  %1739 = vmatmul.bf16.gmra.mxu0 %v3248_v47 }
 0x249   : > { %1690 = vmatmul.bf16.gmra.mxu3 %v3250_v48  ;;  %1788 = vmatmul.bf16.gmra.mxu1 %v3250_v48 }
 0x24a   : > { %1874 = vst [vmem:[%s3282_s29 + $0x258] sm:$0xff] %v1594_v51 }
 0x24b   : > { %v1446_v55 = vpop.f32.mrf.mxu2 }
 0x24c   : > { %v1447_v54 = vadd.f32 %v1446_v55, %v3382_v4  ;;  %v1495_v57 = vpop.f32.mrf.mxu3 }
 0x24d   : > { %v1546_v59 = vpop.f32.mrf.mxu0 }
 0x24e   : > { %v1496_v56 = vadd.f32 %v1495_v57, %v1447_v54  ;;  %v1547_v60 = vadd.f32 %v1546_v59, %v3374_v58  ;;  %v1595_v61 = vpop.f32.mrf.mxu1 }
 0x250   : > { %1873 = vst [vmem:[%s3282_s29 + $0x250] sm:$0xff] %v1496_v56  ;;  %v1596_v62 = vadd.f32 %v1595_v61, %v1547_v60 }
 0x252   : > { %1880 = vst [vmem:[%s3282_s29 + $0x288] sm:$0xff] %v1596_v62 }
 0x253   : > { %v1448_v47 = vpop.f32.mrf.mxu2 }
 0x254   : > { %v1449_v1 = vadd.f32 %v1448_v47, %v3382_v4  ;;  %v1497_v2 = vpop.f32.mrf.mxu3 }
 0x255   : > { %v1549_v48 = vpop.f32.mrf.mxu0 }
 0x256   : > { %v1498_v3 = vadd.f32 %v1497_v2, %v1449_v1  ;;  %v1550_v24 = vadd.f32 %v1549_v48, %v3374_v58  ;;  %v1598_v37 = vpop.f32.mrf.mxu1 }
 0x258   : > { %1879 = vst [vmem:[%s3282_s29 + $0x280] sm:$0xff] %v1498_v3  ;;  %v1599_v5 = vadd.f32 %v1598_v37, %v1550_v24  ;;  %1646 = vmatmul.bf16.gmra.mxu2 %v3260_v13  ;;  %1744 = vmatmul.bf16.gmra.mxu0 %v3260_v13  ;;  %v3476_v13 = vperm.slane %v3268_v23, 5 }
 0x259   : > { %1695 = vmatmul.bf16.gmra.mxu3 %v3262_v42  ;;  %1793 = vmatmul.bf16.gmra.mxu1 %v3262_v42 }
 0x25a   : > { %1886 = vst [vmem:[%s3282_s29 + $0x2b8] sm:$0xff] %v1599_v5 }
 0x25b   : > { %v1451_v6 = vpop.f32.mrf.mxu2 }
 0x25c   : > { %v1452_v7 = vadd.f32 %v1451_v6, %v3382_v4  ;;  %v1500_v8 = vpop.f32.mrf.mxu3 }
 0x25d   : > { %v1551_v21 = vpop.f32.mrf.mxu0 }
 0x25e   : > { %v1501_v9 = vadd.f32 %v1500_v8, %v1452_v7  ;;  %v1552_v10 = vadd.f32 %v1551_v21, %v3374_v58  ;;  %v1600_v22 = vpop.f32.mrf.mxu1 }
 0x260   : > { %1885 = vst [vmem:[%s3282_s29 + $0x2b0] sm:$0xff] %v1501_v9  ;;  %v1601_v63 = vadd.f32 %v1600_v22, %v1552_v10 }
 0x262   : > { %1892 = vst [vmem:[%s3282_s29 + $0x2e8] sm:$0xff] %v1601_v63 }
 0x263   : > { %v1453_v11 = vpop.f32.mrf.mxu2 }
 0x264   : > { %v1454_v42 = vadd.f32 %v1453_v11, %v3382_v4  ;;  %v1502_v12 = vpop.f32.mrf.mxu3 }
 0x265   : > { %v1710_v43 = vpop.f32.mrf.mxu0 }
 0x266   : > { %v1503_v0 = vadd.f32 %v1502_v12, %v1454_v42  ;;  %v1711_v14 = vadd.f32 %v1710_v43, %v3476_v13  ;;  %v1759_v16 = vpop.f32.mrf.mxu1 }
 0x268   : > { %1891 = vst [vmem:[%s3282_s29 + $0x2e0] sm:$0xff] %v1503_v0  ;;  %v1760_v58 = vadd.f32 %v1759_v16, %v1711_v14 }
 0x26a   : > { %1804 = vst [vmem:[%s3282_s29 + $0x28] sm:$0xff] %v1760_v58 }
 0x26b   : > { %v1612_v19 = vpop.f32.mrf.mxu2 }
 0x26c   : > { %v1613_v20 = vadd.f32 %v1612_v19, %v3482_v18  ;;  %v1661_v27 = vpop.f32.mrf.mxu3 }
 0x26d   : > { %v1712_v4 = vpop.f32.mrf.mxu0 }
 0x26e   : > { %v1662_v28 = vadd.f32 %v1661_v27, %v1613_v20  ;;  %v1713_v52 = vadd.f32 %v1712_v4, %v3476_v13  ;;  %v1761_v29 = vpop.f32.mrf.mxu1 }
 0x270   : > { %1803 = vst [vmem:[%s3282_s29 + $0x20] sm:$0xff] %v1662_v28  ;;  %v1762_v30 = vadd.f32 %v1761_v29, %v1713_v52 }
 0x272   : > { %1810 = vst [vmem:[%s3282_s29 + $0x58] sm:$0xff] %v1762_v30 }
 0x273   : > { %v1614_v53 = vpop.f32.mrf.mxu2 }
 0x274   : > { %v1615_v31 = vadd.f32 %v1614_v53, %v3482_v18  ;;  %v1663_v23 = vpop.f32.mrf.mxu3 }
 0x275   : > { %v1715_v32 = vpop.f32.mrf.mxu0 }
 0x276   : > { %v1664_v33 = vadd.f32 %v1663_v23, %v1615_v31  ;;  %v1716_v25 = vadd.f32 %v1715_v32, %v3476_v13  ;;  %v1764_v34 = vpop.f32.mrf.mxu1 }
 0x278   : > { %1809 = vst [vmem:[%s3282_s29 + $0x50] sm:$0xff] %v1664_v33  ;;  %v1765_v35 = vadd.f32 %v1764_v34, %v1716_v25 }
 0x27a   : > { %1816 = vst [vmem:[%s3282_s29 + $0x88] sm:$0xff] %v1765_v35 }
 0x27b   : > { %v1617_v26 = vpop.f32.mrf.mxu2 }
 0x27c   : > { %v1618_v36 = vadd.f32 %v1617_v26, %v3482_v18  ;;  %v1666_v38 = vpop.f32.mrf.mxu3 }
 0x27d   : > { %v1717_v39 = vpop.f32.mrf.mxu0 }
 0x27e   : > { %v1667_v40 = vadd.f32 %v1666_v38, %v1618_v36  ;;  %v1718_v41 = vadd.f32 %v1717_v39, %v3476_v13  ;;  %v1766_v15 = vpop.f32.mrf.mxu1 }
 0x280   : > { %1815 = vst [vmem:[%s3282_s29 + $0x80] sm:$0xff] %v1667_v40  ;;  %v1767_v44 = vadd.f32 %v1766_v15, %v1718_v41 }
 0x282   : > { %1822 = vst [vmem:[%s3282_s29 + $0xb8] sm:$0xff] %v1767_v44 }
 0x283   : > { %v1619_v45 = vpop.f32.mrf.mxu2 }
 0x284   : > { %v1620_v17 = vadd.f32 %v1619_v45, %v3482_v18  ;;  %v1668_v46 = vpop.f32.mrf.mxu3 }
 0x285   : > { %v1720_v49 = vpop.f32.mrf.mxu0 }
 0x286   : > { %v1669_v50 = vadd.f32 %v1668_v46, %v1620_v17  ;;  %v1721_v51 = vadd.f32 %v1720_v49, %v3476_v13  ;;  %v1769_v55 = vpop.f32.mrf.mxu1 }
 0x288   : > { %1821 = vst [vmem:[%s3282_s29 + $0xb0] sm:$0xff] %v1669_v50  ;;  %v1770_v54 = vadd.f32 %v1769_v55, %v1721_v51 }
 0x28a   : > { %1828 = vst [vmem:[%s3282_s29 + $0xe8] sm:$0xff] %v1770_v54 }
 0x28b   : > { %v1622_v57 = vpop.f32.mrf.mxu2 }
 0x28c   : > { %v1623_v59 = vadd.f32 %v1622_v57, %v3482_v18  ;;  %v1671_v56 = vpop.f32.mrf.mxu3 }
 0x28d   : > { %v1722_v60 = vpop.f32.mrf.mxu0 }
 0x28e   : > { %v1672_v61 = vadd.f32 %v1671_v56, %v1623_v59  ;;  %v1723_v62 = vadd.f32 %v1722_v60, %v3476_v13  ;;  %v1771_v47 = vpop.f32.mrf.mxu1 }
 0x290   : > { %1827 = vst [vmem:[%s3282_s29 + $0xe0] sm:$0xff] %v1672_v61  ;;  %v1772_v1 = vadd.f32 %v1771_v47, %v1723_v62 }
 0x292   : > { %1834 = vst [vmem:[%s3282_s29 + $0x118] sm:$0xff] %v1772_v1 }
 0x293   : > { %v1624_v2 = vpop.f32.mrf.mxu2 }
 0x294   : > { %v1625_v48 = vadd.f32 %v1624_v2, %v3482_v18  ;;  %v1673_v3 = vpop.f32.mrf.mxu3 }
 0x295   : > { %v1725_v24 = vpop.f32.mrf.mxu0 }
 0x296   : > { %v1674_v37 = vadd.f32 %v1673_v3, %v1625_v48  ;;  %v1726_v5 = vadd.f32 %v1725_v24, %v3476_v13  ;;  %v1774_v6 = vpop.f32.mrf.mxu1 }
 0x298   : > { %1833 = vst [vmem:[%s3282_s29 + $0x110] sm:$0xff] %v1674_v37  ;;  %v1775_v7 = vadd.f32 %v1774_v6, %v1726_v5 }
 0x29a   : > { %1840 = vst [vmem:[%s3282_s29 + $0x148] sm:$0xff] %v1775_v7 }
 0x29b   : > { %v1627_v8 = vpop.f32.mrf.mxu2 }
 0x29c   : > { %v1628_v21 = vadd.f32 %v1627_v8, %v3482_v18  ;;  %v1676_v9 = vpop.f32.mrf.mxu3 }
 0x29d   : > { %v1727_v10 = vpop.f32.mrf.mxu0 }
 0x29e   : > { %v1677_v22 = vadd.f32 %v1676_v9, %v1628_v21  ;;  %v1728_v63 = vadd.f32 %v1727_v10, %v3476_v13  ;;  %v1776_v11 = vpop.f32.mrf.mxu1 }
 0x2a0   : > { %1839 = vst [vmem:[%s3282_s29 + $0x140] sm:$0xff] %v1677_v22  ;;  %v1777_v42 = vadd.f32 %v1776_v11, %v1728_v63 }
 0x2a2   : > { %1846 = vst [vmem:[%s3282_s29 + $0x178] sm:$0xff] %v1777_v42 }
 0x2a3   : > { %v1629_v12 = vpop.f32.mrf.mxu2 }
 0x2a4   : > { %v1630_v43 = vadd.f32 %v1629_v12, %v3482_v18  ;;  %v1678_v0 = vpop.f32.mrf.mxu3 }
 0x2a5   : > { %v1730_v14 = vpop.f32.mrf.mxu0 }
 0x2a6   : > { %v1679_v16 = vadd.f32 %v1678_v0, %v1630_v43  ;;  %v1731_v58 = vadd.f32 %v1730_v14, %v3476_v13  ;;  %v1779_v19 = vpop.f32.mrf.mxu1 }
 0x2a8   : > { %1845 = vst [vmem:[%s3282_s29 + $0x170] sm:$0xff] %v1679_v16  ;;  %v1780_v20 = vadd.f32 %v1779_v19, %v1731_v58 }
 0x2aa   : > { %1852 = vst [vmem:[%s3282_s29 + $0x1a8] sm:$0xff] %v1780_v20 }
 0x2ab   : > { %v1632_v27 = vpop.f32.mrf.mxu2 }
 0x2ac   : > { %v1633_v4 = vadd.f32 %v1632_v27, %v3482_v18  ;;  %v1681_v28 = vpop.f32.mrf.mxu3 }
 0x2ad   : > { %v1732_v52 = vpop.f32.mrf.mxu0 }
 0x2ae   : > { %v1682_v29 = vadd.f32 %v1681_v28, %v1633_v4  ;;  %v1733_v30 = vadd.f32 %v1732_v52, %v3476_v13  ;;  %v1781_v53 = vpop.f32.mrf.mxu1 }
 0x2b0   : > { %1851 = vst [vmem:[%s3282_s29 + $0x1a0] sm:$0xff] %v1682_v29  ;;  %v1782_v31 = vadd.f32 %v1781_v53, %v1733_v30 }
 0x2b2   : > { %1858 = vst [vmem:[%s3282_s29 + $0x1d8] sm:$0xff] %v1782_v31 }
 0x2b3   : > { %v1634_v23 = vpop.f32.mrf.mxu2 }
 0x2b4   : > { %v1635_v32 = vadd.f32 %v1634_v23, %v3482_v18  ;;  %v1683_v33 = vpop.f32.mrf.mxu3 }
 0x2b5   : > { %v1735_v25 = vpop.f32.mrf.mxu0 }
 0x2b6   : > { %v1684_v34 = vadd.f32 %v1683_v33, %v1635_v32  ;;  %v1736_v35 = vadd.f32 %v1735_v25, %v3476_v13  ;;  %v1784_v26 = vpop.f32.mrf.mxu1 }
 0x2b8   : > { %1857 = vst [vmem:[%s3282_s29 + $0x1d0] sm:$0xff] %v1684_v34  ;;  %v1785_v36 = vadd.f32 %v1784_v26, %v1736_v35 }
 0x2ba   : > { %1864 = vst [vmem:[%s3282_s29 + $0x208] sm:$0xff] %v1785_v36 }
 0x2bb   : > { %v1637_v38 = vpop.f32.mrf.mxu2 }
 0x2bc   : > { %v1638_v39 = vadd.f32 %v1637_v38, %v3482_v18  ;;  %v1686_v40 = vpop.f32.mrf.mxu3 }
 0x2bd   : > { %v1737_v41 = vpop.f32.mrf.mxu0 }
 0x2be   : > { %v1687_v15 = vadd.f32 %v1686_v40, %v1638_v39  ;;  %v1738_v44 = vadd.f32 %v1737_v41, %v3476_v13  ;;  %v1786_v45 = vpop.f32.mrf.mxu1 }
 0x2c0   : > { %1863 = vst [vmem:[%s3282_s29 + $0x200] sm:$0xff] %v1687_v15  ;;  %v1787_v17 = vadd.f32 %v1786_v45, %v1738_v44 }
 0x2c2   : > { %1870 = vst [vmem:[%s3282_s29 + $0x238] sm:$0xff] %v1787_v17 }
 0x2c3   : > { %v1639_v46 = vpop.f32.mrf.mxu2 }
 0x2c4   : > { %v1640_v49 = vadd.f32 %v1639_v46, %v3482_v18  ;;  %v1688_v50 = vpop.f32.mrf.mxu3 }
 0x2c5   : > { %v1740_v51 = vpop.f32.mrf.mxu0 }
 0x2c6   : > { %v1689_v55 = vadd.f32 %v1688_v50, %v1640_v49  ;;  %v1741_v54 = vadd.f32 %v1740_v51, %v3476_v13  ;;  %v1789_v57 = vpop.f32.mrf.mxu1 }
 0x2c8   : > { %1869 = vst [vmem:[%s3282_s29 + $0x230] sm:$0xff] %v1689_v55  ;;  %v1790_v59 = vadd.f32 %v1789_v57, %v1741_v54 }
 0x2ca   : > { %1876 = vst [vmem:[%s3282_s29 + $0x268] sm:$0xff] %v1790_v59 }
 0x2cb   : > { %v1642_v56 = vpop.f32.mrf.mxu2 }
 0x2cc   : > { %v1643_v60 = vadd.f32 %v1642_v56, %v3482_v18  ;;  %v1691_v61 = vpop.f32.mrf.mxu3 }
 0x2cd   : > { %v1742_v62 = vpop.f32.mrf.mxu0 }
 0x2ce   : > { %v1692_v47 = vadd.f32 %v1691_v61, %v1643_v60  ;;  %v1743_v1 = vadd.f32 %v1742_v62, %v3476_v13  ;;  %v1791_v2 = vpop.f32.mrf.mxu1 }
 0x2d0   : > { %1875 = vst [vmem:[%s3282_s29 + $0x260] sm:$0xff] %v1692_v47  ;;  %v1792_v48 = vadd.f32 %v1791_v2, %v1743_v1 }
 0x2d2   : > { %1882 = vst [vmem:[%s3282_s29 + $0x298] sm:$0xff] %v1792_v48 }
 0x2d3   : > { %v1644_v3 = vpop.f32.mrf.mxu2 }
 0x2d4   : > { %v1645_v24 = vadd.f32 %v1644_v3, %v3482_v18  ;;  %v1693_v37 = vpop.f32.mrf.mxu3 }
 0x2d5   : > { %v1745_v5 = vpop.f32.mrf.mxu0 }
 0x2d6   : > { %v1694_v6 = vadd.f32 %v1693_v37, %v1645_v24  ;;  %v1746_v7 = vadd.f32 %v1745_v5, %v3476_v13  ;;  %v1794_v8 = vpop.f32.mrf.mxu1 }
 0x2d8   : > { %1881 = vst [vmem:[%s3282_s29 + $0x290] sm:$0xff] %v1694_v6  ;;  %v1795_v21 = vadd.f32 %v1794_v8, %v1746_v7 }
 0x2da   : > { %1888 = vst [vmem:[%s3282_s29 + $0x2c8] sm:$0xff] %v1795_v21 }
 0x2db   : > { %v1647_v9 = vpop.f32.mrf.mxu2 }
 0x2dc   : > { %v1648_v10 = vadd.f32 %v1647_v9, %v3482_v18  ;;  %v1696_v22 = vpop.f32.mrf.mxu3 }
 0x2dd   : > { %v1747_v63 = vpop.f32.mrf.mxu0 }
 0x2de   : > { %v1697_v11 = vadd.f32 %v1696_v22, %v1648_v10  ;;  %v1748_v42 = vadd.f32 %v1747_v63, %v3476_v13  ;;  %v1796_v12 = vpop.f32.mrf.mxu1 }
 0x2e0   : > { %1887 = vst [vmem:[%s3282_s29 + $0x2c0] sm:$0xff] %v1697_v11  ;;  %v1797_v43 = vadd.f32 %v1796_v12, %v1748_v42 }
 0x2e2   : > { %1894 = vst [vmem:[%s3282_s29 + $0x2f8] sm:$0xff] %v1797_v43 }
 0x2e3   : > { %v1649_v0 = vpop.f32.mrf.mxu2 }
 0x2e4   : > { %v1650_v14 = vadd.f32 %v1649_v0, %v3482_v18  ;;  %v1698_v16 = vpop.f32.mrf.mxu3 }
 0x2e6   : > { %v1699_v58 = vadd.f32 %v1698_v16, %v1650_v14 }
 0x2e8   : > { %1893 = vst [vmem:[%s3282_s29 + $0x2f0] sm:$0xff] %v1699_v58 }
 0x2e9   : > { %2935 = shalt.err (!%p2932_p10)
}
 0x2ea   : > { %s2994_s28 = smov 768   ;;  %s2995_s24 = smov 48  }
 0x2eb   : > { %2681 = dma.vmem_to_hbm [thread:$0]  (%p3109_p0), %s1910_s7, 12288, %s1912_s22, %s1896_s17, %s2994_s28, %s2994_s28, %s2995_s24  }
 0x2ec PF: > { %p2713_p11 = scmp.ge.s32.totalorder %s2982_s21, 2  ;;  %s1926_s29 = sand.u32 1, %s2970_s18  }
 0x2ed   : > { %s1927_s30 = scalar_lea.sflag [#allocation4], %s1926_s29 }
 0x2ee   : > { %p2701_p12 = pnand %p2713_p11, %p3061_p6 }
 0x2f0   : > { %p2702_p13 = pneg %p2701_p12 }
 0x2f2   : > { %2965 = dma.done.wait (%p2702_p13), %s1927_s30, 12288  }
 0x2f3   : > { %2967 = vsyncadd (%p2702_p13), %s1927_s30, 4294955008  ;;  %p20_p3 = scmp.ge.s32.totalorder %s3099_s11, 5   ;;  %s3592_s18 = smov %s2974_s19 }
 0x2f4   : > { %s3593_s19 = smov %s2978_s20  ;;  %s3594_s20 = smov %s3115_s15 }
 0x2f5   : > { %s3595_s21 = smov %s3099_s11  ;;  %22 = sbr.rel (!%p20_p3) target bundleno = 7 (0x7), region = 101 }
 0x2fa   :  { %1933 = vsyncpa [#allocation3], 1 }
 0x2fb   :  { %1935 = vsyncpa [#allocation3 + $0x1], 1 }
 0x2fc   :  { %1936 = vsyncpa [#allocation6], 1 }
 0x2fd   :  { %1937 = vsyncpa [#allocation9], 1 }
 0x2fe   :  { %1938 = vsyncpa [#allocation4], 1 }
 0x2ff   :  { %1940 = vsyncpa [#allocation4 + $0x1], 1 }

</bundles_post_ra>
